<compile_context>
chip_gen: v5e
topology: v5e:2x2
jax: 0.10.0
libtpu: 0.0.40
codegen_flags: <defaults>
</compile_context>

<pallas_src>
import jax
import jax.numpy as jnp
from jax import lax
from jax.experimental import pallas as pl
from jax.experimental.pallas import tpu as pltpu


def _make_sepconv_kernel(K, H, W, C, O):
    HW = H * W
    KK = K * K

    def kernel(x_ref, weff_ref, beff_ref, o_ref):
        # x_ref:    (Nb, C, H*W)  NCHW input, spatial flattened on lanes
        # weff_ref: (O, C*K*K)    fused dense weights (pointwise folded in)
        # beff_ref: (O, 1)        fused bias = b_pw + W_pw @ b_dw
        # o_ref:    (Nb, O, H*W)  full-width conv output; the valid region is
        #                         p = ho*W + wo with ho < Ho, wo < Wo
        Nb = x_ref.shape[0]

        x = x_ref[...].astype(jnp.float32)        # ~4 vregs at these shapes
        weff = weff_ref[...].astype(jnp.float32)  # 1 vreg
        beff = beff_ref[...].astype(jnp.float32)  # (O, 1)

        # Start the accumulator from the fused bias (saves a final add).
        acc = jnp.broadcast_to(beff[None, :, :], (Nb, O, HW)).astype(jnp.float32)

        # Dense KxK conv over C input channels, fully unrolled tap loop.
        # The tap (kh, kw) contribution at flattened position p is
        # x[n, c, p + kh*W + kw]; a lane roll by -(kh*W+kw) aligns it with p.
        # For every valid p (ho < Ho, wo < Wo): p + off <= H*W - 1 and
        # wo + kw <= W - 1, so neither the roll wrap-around nor a row wrap
        # ever touches a valid output position.
        for kh in range(K):
            for kw in range(K):
                off = kh * W + kw
                x_sh = pltpu.roll(x, HW - off, axis=2) if off else x  # (Nb,C,HW)
                for c in range(C):
                    idx = c * KK + kh * K + kw
                    w_col = weff[:, idx:idx + 1]                      # (O, 1)
                    # (Nb,1,HW) * (1,O,1) -> (Nb,O,HW)  [VPU, lane-dense]
                    acc = acc + x_sh[:, c:c + 1, :] * w_col[None, :, :]

        o_ref[...] = acc.astype(o_ref.dtype)

    return kernel


def separable_conv2d(x_nchw, w_dw, b_dw, w_pw, b_pw, *, block_n=None):
    """x_nchw: (N,C,H,W); w_dw: (C,1,K,K); b_dw: (C,); w_pw: (O,C,1,1); b_pw: (O,)."""
    N, C, H, W = x_nchw.shape
    K = w_dw.shape[2]
    O = w_pw.shape[0]
    Ho, Wo = H - K + 1, W - K + 1
    HW = H * W

    # Default: the whole batch in one grid step (grid is a serial loop on a
    # TC; per-step overhead dominates small per-image work).  Splitting only
    # pays on v7x megacore when per-image work is large; if requested it must
    # divide N exactly (no silent fallback).
    if block_n is None:
        block_n = N
    if block_n <= 0 or N % block_n != 0:
        raise ValueError(f"block_n={block_n} must evenly divide N={N}")
    grid_n = N // block_n

    # --- one-time weight prep (tiny, elementwise -> exact f32) -------------
    f32 = jnp.float32
    w_dw_ckk = w_dw[:, 0, :, :].reshape(C, K * K).astype(f32)     # (C, KK)
    w_pw_oc = w_pw[:, :, 0, 0].astype(f32)                        # (O, C)
    # Fold the (linear) pointwise conv through the depthwise conv:
    #   W_pw @ (DW(x) + b_dw) + b_pw == Conv(x, W_eff) + b_eff
    w_eff = (w_pw_oc[:, :, None] * w_dw_ckk[None, :, :]).reshape(O, C * K * K)
    b_eff = (b_pw.astype(f32) + (w_pw_oc * b_dw.astype(f32)[None, :]).sum(axis=1))
    b_eff = b_eff.reshape(O, 1)

    # NCHW consumed directly; flattening (H, W) -> H*W is a free view reshape.
    x_flat = x_nchw.reshape(N, C, HW)

    out_full = pl.pallas_call(
        _make_sepconv_kernel(K, H, W, C, O),
        out_shape=jax.ShapeDtypeStruct((N, O, HW), x_nchw.dtype),
        grid_spec=pltpu.PrefetchScalarGridSpec(
            num_scalar_prefetch=0,
            grid=(grid_n,),
            in_specs=[
                pl.BlockSpec((block_n, C, HW), lambda b: (b, 0, 0)),
                pl.BlockSpec((O, C * K * K), lambda b: (0, 0)),
                pl.BlockSpec((O, 1), lambda b: (0, 0)),
            ],
            out_specs=pl.BlockSpec((block_n, O, HW), lambda b: (b, 0, 0)),
        ),
        compiler_params=pltpu.CompilerParams(
            dimension_semantics=("parallel",),
            vmem_limit_bytes=32 * 1024 * 1024),
    )(x_flat, w_eff, b_eff)

    # Lane-dense (N, O, H*W) -> NCHW: free view reshape + VALID-region slice.
    return out_full.reshape(N, O, H, W)[:, :, :Ho, :Wo]


def _reference(x, w_dw, b_dw, w_pw, b_pw):
    """Pure-JAX reference matching PyTorch Conv2d semantics (NCHW, VALID)."""
    hp = lax.Precision.HIGHEST
    dw = lax.conv_general_dilated(
        x, w_dw, window_strides=(1, 1), padding="VALID",
        dimension_numbers=("NCHW", "OIHW", "NCHW"),
        feature_group_count=x.shape[1], precision=hp)
    dw = dw + b_dw[None, :, None, None]
    pw = lax.conv_general_dilated(
        dw, w_pw, window_strides=(1, 1), padding="VALID",
        dimension_numbers=("NCHW", "OIHW", "NCHW"), precision=hp)
    return pw + b_pw[None, :, None, None]


if __name__ == "__main__":
    # Small shapes consistent with the module: N=2, C_in=4, H=W=16, K=3, C_out=8.
    N, C_in, H, W = 2, 4, 16, 16
    C_out, K = 8, 3

    key = jax.random.PRNGKey(0)
    k_x, k_wd, k_bd, k_wp, k_bp = jax.random.split(key, 5)

    x = jax.random.normal(k_x, (N, C_in, H, W), dtype=jnp.float32)
    # Depthwise Conv2d weights: (C_in * depth_multiplier, 1, K, K), bias (C_in,)
    w_dw = jax.random.normal(k_wd, (C_in, 1, K, K), dtype=jnp.float32) * 0.2
    b_dw = jax.random.normal(k_bd, (C_in,), dtype=jnp.float32) * 0.1
    # Pointwise Conv2d weights: (C_out, C_in, 1, 1), bias (C_out,)
    w_pw = jax.random.normal(k_wp, (C_out, C_in, 1, 1), dtype=jnp.float32) * 0.2
    b_pw = jax.random.normal(k_bp, (C_out,), dtype=jnp.float32) * 0.1

    out = separable_conv2d(x, w_dw, b_dw, w_pw, b_pw)
    out = jax.block_until_ready(out)

    ref = _reference(x, w_dw, b_dw, w_pw, b_pw)
    assert out.shape == (N, C_out, H - K + 1, W - K + 1), out.shape
    # All-f32 path (VPU FMAs vs HIGHEST-precision XLA conv): only reassociation
    # / weight-prefolding rounding remains, so a tight tolerance is safe.
    assert jnp.allclose(out, ref, atol=1e-4, rtol=1e-4), "mismatch vs reference"

    print("KERNEL_OK")
</pallas_src>

<mosaic_0001>
module attributes {stable_mosaic.version = 11 : i64} {
  func.func @kernel(%arg0: i32, %arg1: memref<2x4x256xf32, #tpu.memory_space<vmem>>, %arg2: memref<8x36xf32, #tpu.memory_space<vmem>>, %arg3: memref<8x1xf32, #tpu.memory_space<vmem>>, %arg4: memref<2x8x256xf32, #tpu.memory_space<vmem>>) attributes {dimension_semantics = [#tpu.dimension_semantics<parallel>], iteration_bounds = array<i64: 1>, scalar_prefetch = 0 : i64, scratch_operands = 0 : i64, tpu.core_type = #tpu.core_type<tc>, window_params = [{transform_indices = @transform_0, window_bounds = array<i64: 2, 4, 256>}, {pipeline_mode = #tpu.pipeline_mode<synchronous>, transform_indices = @transform_1, window_bounds = array<i64: 8, 36>}, {pipeline_mode = #tpu.pipeline_mode<synchronous>, transform_indices = @transform_2, window_bounds = array<i64: 8, 1>}, {transform_indices = @transform_3, window_bounds = array<i64: 2, 8, 256>}]} {
    %c0 = arith.constant 0 : index
    %c0_0 = arith.constant 0 : index
    %c0_1 = arith.constant 0 : index
    %0 = vector.load %arg1[%c0, %c0_0, %c0_1] : memref<2x4x256xf32, #tpu.memory_space<vmem>>, vector<2x4x256xf32>
    %c0_2 = arith.constant 0 : index
    %c0_3 = arith.constant 0 : index
    %1 = vector.load %arg2[%c0_2, %c0_3] : memref<8x36xf32, #tpu.memory_space<vmem>>, vector<8x36xf32>
    %c0_4 = arith.constant 0 : index
    %c0_5 = arith.constant 0 : index
    %2 = vector.load %arg3[%c0_4, %c0_5] : memref<8x1xf32, #tpu.memory_space<vmem>>, vector<8x1xf32>
    %3 = vector.shape_cast %2 : vector<8x1xf32> to vector<1x8x1xf32>
    %4 = vector.shape_cast %3 : vector<1x8x1xf32> to vector<1x8x1xf32>
    %5 = vector.broadcast %4 : vector<1x8x1xf32> to vector<2x8x256xf32>
    %6 = vector.extract_strided_slice %1 {offsets = [0, 0], sizes = [8, 1], strides = [1, 1]} : vector<8x36xf32> to vector<8x1xf32>
    %7 = vector.extract_strided_slice %0 {offsets = [0, 0, 0], sizes = [2, 1, 256], strides = [1, 1, 1]} : vector<2x4x256xf32> to vector<2x1x256xf32>
    %8 = vector.shape_cast %6 : vector<8x1xf32> to vector<1x8x1xf32>
    %9 = vector.broadcast %7 : vector<2x1x256xf32> to vector<2x8x256xf32>
    %10 = vector.broadcast %8 : vector<1x8x1xf32> to vector<2x8x256xf32>
    %11 = arith.mulf %9, %10 : vector<2x8x256xf32>
    %12 = arith.addf %5, %11 : vector<2x8x256xf32>
    %13 = vector.extract_strided_slice %1 {offsets = [0, 9], sizes = [8, 1], strides = [1, 1]} : vector<8x36xf32> to vector<8x1xf32>
    %14 = vector.extract_strided_slice %0 {offsets = [0, 1, 0], sizes = [2, 1, 256], strides = [1, 1, 1]} : vector<2x4x256xf32> to vector<2x1x256xf32>
    %15 = vector.shape_cast %13 : vector<8x1xf32> to vector<1x8x1xf32>
    %16 = vector.broadcast %14 : vector<2x1x256xf32> to vector<2x8x256xf32>
    %17 = vector.broadcast %15 : vector<1x8x1xf32> to vector<2x8x256xf32>
    %18 = arith.mulf %16, %17 : vector<2x8x256xf32>
    %19 = arith.addf %12, %18 : vector<2x8x256xf32>
    %20 = vector.extract_strided_slice %1 {offsets = [0, 18], sizes = [8, 1], strides = [1, 1]} : vector<8x36xf32> to vector<8x1xf32>
    %21 = vector.extract_strided_slice %0 {offsets = [0, 2, 0], sizes = [2, 1, 256], strides = [1, 1, 1]} : vector<2x4x256xf32> to vector<2x1x256xf32>
    %22 = vector.shape_cast %20 : vector<8x1xf32> to vector<1x8x1xf32>
    %23 = vector.broadcast %21 : vector<2x1x256xf32> to vector<2x8x256xf32>
    %24 = vector.broadcast %22 : vector<1x8x1xf32> to vector<2x8x256xf32>
    %25 = arith.mulf %23, %24 : vector<2x8x256xf32>
    %26 = arith.addf %19, %25 : vector<2x8x256xf32>
    %27 = vector.extract_strided_slice %1 {offsets = [0, 27], sizes = [8, 1], strides = [1, 1]} : vector<8x36xf32> to vector<8x1xf32>
    %28 = vector.extract_strided_slice %0 {offsets = [0, 3, 0], sizes = [2, 1, 256], strides = [1, 1, 1]} : vector<2x4x256xf32> to vector<2x1x256xf32>
    %29 = vector.shape_cast %27 : vector<8x1xf32> to vector<1x8x1xf32>
    %30 = vector.broadcast %28 : vector<2x1x256xf32> to vector<2x8x256xf32>
    %31 = vector.broadcast %29 : vector<1x8x1xf32> to vector<2x8x256xf32>
    %32 = arith.mulf %30, %31 : vector<2x8x256xf32>
    %33 = arith.addf %26, %32 : vector<2x8x256xf32>
    %c255_i32 = arith.constant 255 : i32
    %34 = tpu.dynamic_rotate %0 by %c255_i32 dim 2 : vector<2x4x256xf32>, i32 -> vector<2x4x256xf32>
    %35 = vector.extract_strided_slice %1 {offsets = [0, 1], sizes = [8, 1], strides = [1, 1]} : vector<8x36xf32> to vector<8x1xf32>
    %36 = vector.extract_strided_slice %34 {offsets = [0, 0, 0], sizes = [2, 1, 256], strides = [1, 1, 1]} : vector<2x4x256xf32> to vector<2x1x256xf32>
    %37 = vector.shape_cast %35 : vector<8x1xf32> to vector<1x8x1xf32>
    %38 = vector.broadcast %36 : vector<2x1x256xf32> to vector<2x8x256xf32>
    %39 = vector.broadcast %37 : vector<1x8x1xf32> to vector<2x8x256xf32>
    %40 = arith.mulf %38, %39 : vector<2x8x256xf32>
    %41 = arith.addf %33, %40 : vector<2x8x256xf32>
    %42 = vector.extract_strided_slice %1 {offsets = [0, 10], sizes = [8, 1], strides = [1, 1]} : vector<8x36xf32> to vector<8x1xf32>
    %43 = vector.extract_strided_slice %34 {offsets = [0, 1, 0], sizes = [2, 1, 256], strides = [1, 1, 1]} : vector<2x4x256xf32> to vector<2x1x256xf32>
    %44 = vector.shape_cast %42 : vector<8x1xf32> to vector<1x8x1xf32>
    %45 = vector.broadcast %43 : vector<2x1x256xf32> to vector<2x8x256xf32>
    %46 = vector.broadcast %44 : vector<1x8x1xf32> to vector<2x8x256xf32>
    %47 = arith.mulf %45, %46 : vector<2x8x256xf32>
    %48 = arith.addf %41, %47 : vector<2x8x256xf32>
    %49 = vector.extract_strided_slice %1 {offsets = [0, 19], sizes = [8, 1], strides = [1, 1]} : vector<8x36xf32> to vector<8x1xf32>
    %50 = vector.extract_strided_slice %34 {offsets = [0, 2, 0], sizes = [2, 1, 256], strides = [1, 1, 1]} : vector<2x4x256xf32> to vector<2x1x256xf32>
    %51 = vector.shape_cast %49 : vector<8x1xf32> to vector<1x8x1xf32>
    %52 = vector.broadcast %50 : vector<2x1x256xf32> to vector<2x8x256xf32>
    %53 = vector.broadcast %51 : vector<1x8x1xf32> to vector<2x8x256xf32>
    %54 = arith.mulf %52, %53 : vector<2x8x256xf32>
    %55 = arith.addf %48, %54 : vector<2x8x256xf32>
    %56 = vector.extract_strided_slice %1 {offsets = [0, 28], sizes = [8, 1], strides = [1, 1]} : vector<8x36xf32> to vector<8x1xf32>
    %57 = vector.extract_strided_slice %34 {offsets = [0, 3, 0], sizes = [2, 1, 256], strides = [1, 1, 1]} : vector<2x4x256xf32> to vector<2x1x256xf32>
    %58 = vector.shape_cast %56 : vector<8x1xf32> to vector<1x8x1xf32>
    %59 = vector.broadcast %57 : vector<2x1x256xf32> to vector<2x8x256xf32>
    %60 = vector.broadcast %58 : vector<1x8x1xf32> to vector<2x8x256xf32>
    %61 = arith.mulf %59, %60 : vector<2x8x256xf32>
    %62 = arith.addf %55, %61 : vector<2x8x256xf32>
    %c254_i32 = arith.constant 254 : i32
    %63 = tpu.dynamic_rotate %0 by %c254_i32 dim 2 : vector<2x4x256xf32>, i32 -> vector<2x4x256xf32>
    %64 = vector.extract_strided_slice %1 {offsets = [0, 2], sizes = [8, 1], strides = [1, 1]} : vector<8x36xf32> to vector<8x1xf32>
    %65 = vector.extract_strided_slice %63 {offsets = [0, 0, 0], sizes = [2, 1, 256], strides = [1, 1, 1]} : vector<2x4x256xf32> to vector<2x1x256xf32>
    %66 = vector.shape_cast %64 : vector<8x1xf32> to vector<1x8x1xf32>
    %67 = vector.broadcast %65 : vector<2x1x256xf32> to vector<2x8x256xf32>
    %68 = vector.broadcast %66 : vector<1x8x1xf32> to vector<2x8x256xf32>
    %69 = arith.mulf %67, %68 : vector<2x8x256xf32>
    %70 = arith.addf %62, %69 : vector<2x8x256xf32>
    %71 = vector.extract_strided_slice %1 {offsets = [0, 11], sizes = [8, 1], strides = [1, 1]} : vector<8x36xf32> to vector<8x1xf32>
    %72 = vector.extract_strided_slice %63 {offsets = [0, 1, 0], sizes = [2, 1, 256], strides = [1, 1, 1]} : vector<2x4x256xf32> to vector<2x1x256xf32>
    %73 = vector.shape_cast %71 : vector<8x1xf32> to vector<1x8x1xf32>
    %74 = vector.broadcast %72 : vector<2x1x256xf32> to vector<2x8x256xf32>
    %75 = vector.broadcast %73 : vector<1x8x1xf32> to vector<2x8x256xf32>
    %76 = arith.mulf %74, %75 : vector<2x8x256xf32>
    %77 = arith.addf %70, %76 : vector<2x8x256xf32>
    %78 = vector.extract_strided_slice %1 {offsets = [0, 20], sizes = [8, 1], strides = [1, 1]} : vector<8x36xf32> to vector<8x1xf32>
    %79 = vector.extract_strided_slice %63 {offsets = [0, 2, 0], sizes = [2, 1, 256], strides = [1, 1, 1]} : vector<2x4x256xf32> to vector<2x1x256xf32>
    %80 = vector.shape_cast %78 : vector<8x1xf32> to vector<1x8x1xf32>
    %81 = vector.broadcast %79 : vector<2x1x256xf32> to vector<2x8x256xf32>
    %82 = vector.broadcast %80 : vector<1x8x1xf32> to vector<2x8x256xf32>
    %83 = arith.mulf %81, %82 : vector<2x8x256xf32>
    %84 = arith.addf %77, %83 : vector<2x8x256xf32>
    %85 = vector.extract_strided_slice %1 {offsets = [0, 29], sizes = [8, 1], strides = [1, 1]} : vector<8x36xf32> to vector<8x1xf32>
    %86 = vector.extract_strided_slice %63 {offsets = [0, 3, 0], sizes = [2, 1, 256], strides = [1, 1, 1]} : vector<2x4x256xf32> to vector<2x1x256xf32>
    %87 = vector.shape_cast %85 : vector<8x1xf32> to vector<1x8x1xf32>
    %88 = vector.broadcast %86 : vector<2x1x256xf32> to vector<2x8x256xf32>
    %89 = vector.broadcast %87 : vector<1x8x1xf32> to vector<2x8x256xf32>
    %90 = arith.mulf %88, %89 : vector<2x8x256xf32>
    %91 = arith.addf %84, %90 : vector<2x8x256xf32>
    %c240_i32 = arith.constant 240 : i32
    %92 = tpu.dynamic_rotate %0 by %c240_i32 dim 2 : vector<2x4x256xf32>, i32 -> vector<2x4x256xf32>
    %93 = vector.extract_strided_slice %1 {offsets = [0, 3], sizes = [8, 1], strides = [1, 1]} : vector<8x36xf32> to vector<8x1xf32>
    %94 = vector.extract_strided_slice %92 {offsets = [0, 0, 0], sizes = [2, 1, 256], strides = [1, 1, 1]} : vector<2x4x256xf32> to vector<2x1x256xf32>
    %95 = vector.shape_cast %93 : vector<8x1xf32> to vector<1x8x1xf32>
    %96 = vector.broadcast %94 : vector<2x1x256xf32> to vector<2x8x256xf32>
    %97 = vector.broadcast %95 : vector<1x8x1xf32> to vector<2x8x256xf32>
    %98 = arith.mulf %96, %97 : vector<2x8x256xf32>
    %99 = arith.addf %91, %98 : vector<2x8x256xf32>
    %100 = vector.extract_strided_slice %1 {offsets = [0, 12], sizes = [8, 1], strides = [1, 1]} : vector<8x36xf32> to vector<8x1xf32>
    %101 = vector.extract_strided_slice %92 {offsets = [0, 1, 0], sizes = [2, 1, 256], strides = [1, 1, 1]} : vector<2x4x256xf32> to vector<2x1x256xf32>
    %102 = vector.shape_cast %100 : vector<8x1xf32> to vector<1x8x1xf32>
    %103 = vector.broadcast %101 : vector<2x1x256xf32> to vector<2x8x256xf32>
    %104 = vector.broadcast %102 : vector<1x8x1xf32> to vector<2x8x256xf32>
    %105 = arith.mulf %103, %104 : vector<2x8x256xf32>
    %106 = arith.addf %99, %105 : vector<2x8x256xf32>
    %107 = vector.extract_strided_slice %1 {offsets = [0, 21], sizes = [8, 1], strides = [1, 1]} : vector<8x36xf32> to vector<8x1xf32>
    %108 = vector.extract_strided_slice %92 {offsets = [0, 2, 0], sizes = [2, 1, 256], strides = [1, 1, 1]} : vector<2x4x256xf32> to vector<2x1x256xf32>
    %109 = vector.shape_cast %107 : vector<8x1xf32> to vector<1x8x1xf32>
    %110 = vector.broadcast %108 : vector<2x1x256xf32> to vector<2x8x256xf32>
    %111 = vector.broadcast %109 : vector<1x8x1xf32> to vector<2x8x256xf32>
    %112 = arith.mulf %110, %111 : vector<2x8x256xf32>
    %113 = arith.addf %106, %112 : vector<2x8x256xf32>
    %114 = vector.extract_strided_slice %1 {offsets = [0, 30], sizes = [8, 1], strides = [1, 1]} : vector<8x36xf32> to vector<8x1xf32>
    %115 = vector.extract_strided_slice %92 {offsets = [0, 3, 0], sizes = [2, 1, 256], strides = [1, 1, 1]} : vector<2x4x256xf32> to vector<2x1x256xf32>
    %116 = vector.shape_cast %114 : vector<8x1xf32> to vector<1x8x1xf32>
    %117 = vector.broadcast %115 : vector<2x1x256xf32> to vector<2x8x256xf32>
    %118 = vector.broadcast %116 : vector<1x8x1xf32> to vector<2x8x256xf32>
    %119 = arith.mulf %117, %118 : vector<2x8x256xf32>
    %120 = arith.addf %113, %119 : vector<2x8x256xf32>
    %c239_i32 = arith.constant 239 : i32
    %121 = tpu.dynamic_rotate %0 by %c239_i32 dim 2 : vector<2x4x256xf32>, i32 -> vector<2x4x256xf32>
    %122 = vector.extract_strided_slice %1 {offsets = [0, 4], sizes = [8, 1], strides = [1, 1]} : vector<8x36xf32> to vector<8x1xf32>
    %123 = vector.extract_strided_slice %121 {offsets = [0, 0, 0], sizes = [2, 1, 256], strides = [1, 1, 1]} : vector<2x4x256xf32> to vector<2x1x256xf32>
    %124 = vector.shape_cast %122 : vector<8x1xf32> to vector<1x8x1xf32>
    %125 = vector.broadcast %123 : vector<2x1x256xf32> to vector<2x8x256xf32>
    %126 = vector.broadcast %124 : vector<1x8x1xf32> to vector<2x8x256xf32>
    %127 = arith.mulf %125, %126 : vector<2x8x256xf32>
    %128 = arith.addf %120, %127 : vector<2x8x256xf32>
    %129 = vector.extract_strided_slice %1 {offsets = [0, 13], sizes = [8, 1], strides = [1, 1]} : vector<8x36xf32> to vector<8x1xf32>
    %130 = vector.extract_strided_slice %121 {offsets = [0, 1, 0], sizes = [2, 1, 256], strides = [1, 1, 1]} : vector<2x4x256xf32> to vector<2x1x256xf32>
    %131 = vector.shape_cast %129 : vector<8x1xf32> to vector<1x8x1xf32>
    %132 = vector.broadcast %130 : vector<2x1x256xf32> to vector<2x8x256xf32>
    %133 = vector.broadcast %131 : vector<1x8x1xf32> to vector<2x8x256xf32>
    %134 = arith.mulf %132, %133 : vector<2x8x256xf32>
    %135 = arith.addf %128, %134 : vector<2x8x256xf32>
    %136 = vector.extract_strided_slice %1 {offsets = [0, 22], sizes = [8, 1], strides = [1, 1]} : vector<8x36xf32> to vector<8x1xf32>
    %137 = vector.extract_strided_slice %121 {offsets = [0, 2, 0], sizes = [2, 1, 256], strides = [1, 1, 1]} : vector<2x4x256xf32> to vector<2x1x256xf32>
    %138 = vector.shape_cast %136 : vector<8x1xf32> to vector<1x8x1xf32>
    %139 = vector.broadcast %137 : vector<2x1x256xf32> to vector<2x8x256xf32>
    %140 = vector.broadcast %138 : vector<1x8x1xf32> to vector<2x8x256xf32>
    %141 = arith.mulf %139, %140 : vector<2x8x256xf32>
    %142 = arith.addf %135, %141 : vector<2x8x256xf32>
    %143 = vector.extract_strided_slice %1 {offsets = [0, 31], sizes = [8, 1], strides = [1, 1]} : vector<8x36xf32> to vector<8x1xf32>
    %144 = vector.extract_strided_slice %121 {offsets = [0, 3, 0], sizes = [2, 1, 256], strides = [1, 1, 1]} : vector<2x4x256xf32> to vector<2x1x256xf32>
    %145 = vector.shape_cast %143 : vector<8x1xf32> to vector<1x8x1xf32>
    %146 = vector.broadcast %144 : vector<2x1x256xf32> to vector<2x8x256xf32>
    %147 = vector.broadcast %145 : vector<1x8x1xf32> to vector<2x8x256xf32>
    %148 = arith.mulf %146, %147 : vector<2x8x256xf32>
    %149 = arith.addf %142, %148 : vector<2x8x256xf32>
    %c238_i32 = arith.constant 238 : i32
    %150 = tpu.dynamic_rotate %0 by %c238_i32 dim 2 : vector<2x4x256xf32>, i32 -> vector<2x4x256xf32>
    %151 = vector.extract_strided_slice %1 {offsets = [0, 5], sizes = [8, 1], strides = [1, 1]} : vector<8x36xf32> to vector<8x1xf32>
    %152 = vector.extract_strided_slice %150 {offsets = [0, 0, 0], sizes = [2, 1, 256], strides = [1, 1, 1]} : vector<2x4x256xf32> to vector<2x1x256xf32>
    %153 = vector.shape_cast %151 : vector<8x1xf32> to vector<1x8x1xf32>
    %154 = vector.broadcast %152 : vector<2x1x256xf32> to vector<2x8x256xf32>
    %155 = vector.broadcast %153 : vector<1x8x1xf32> to vector<2x8x256xf32>
    %156 = arith.mulf %154, %155 : vector<2x8x256xf32>
    %157 = arith.addf %149, %156 : vector<2x8x256xf32>
    %158 = vector.extract_strided_slice %1 {offsets = [0, 14], sizes = [8, 1], strides = [1, 1]} : vector<8x36xf32> to vector<8x1xf32>
    %159 = vector.extract_strided_slice %150 {offsets = [0, 1, 0], sizes = [2, 1, 256], strides = [1, 1, 1]} : vector<2x4x256xf32> to vector<2x1x256xf32>
    %160 = vector.shape_cast %158 : vector<8x1xf32> to vector<1x8x1xf32>
    %161 = vector.broadcast %159 : vector<2x1x256xf32> to vector<2x8x256xf32>
    %162 = vector.broadcast %160 : vector<1x8x1xf32> to vector<2x8x256xf32>
    %163 = arith.mulf %161, %162 : vector<2x8x256xf32>
    %164 = arith.addf %157, %163 : vector<2x8x256xf32>
    %165 = vector.extract_strided_slice %1 {offsets = [0, 23], sizes = [8, 1], strides = [1, 1]} : vector<8x36xf32> to vector<8x1xf32>
    %166 = vector.extract_strided_slice %150 {offsets = [0, 2, 0], sizes = [2, 1, 256], strides = [1, 1, 1]} : vector<2x4x256xf32> to vector<2x1x256xf32>
    %167 = vector.shape_cast %165 : vector<8x1xf32> to vector<1x8x1xf32>
    %168 = vector.broadcast %166 : vector<2x1x256xf32> to vector<2x8x256xf32>
    %169 = vector.broadcast %167 : vector<1x8x1xf32> to vector<2x8x256xf32>
    %170 = arith.mulf %168, %169 : vector<2x8x256xf32>
    %171 = arith.addf %164, %170 : vector<2x8x256xf32>
    %172 = vector.extract_strided_slice %1 {offsets = [0, 32], sizes = [8, 1], strides = [1, 1]} : vector<8x36xf32> to vector<8x1xf32>
    %173 = vector.extract_strided_slice %150 {offsets = [0, 3, 0], sizes = [2, 1, 256], strides = [1, 1, 1]} : vector<2x4x256xf32> to vector<2x1x256xf32>
    %174 = vector.shape_cast %172 : vector<8x1xf32> to vector<1x8x1xf32>
    %175 = vector.broadcast %173 : vector<2x1x256xf32> to vector<2x8x256xf32>
    %176 = vector.broadcast %174 : vector<1x8x1xf32> to vector<2x8x256xf32>
    %177 = arith.mulf %175, %176 : vector<2x8x256xf32>
    %178 = arith.addf %171, %177 : vector<2x8x256xf32>
    %c224_i32 = arith.constant 224 : i32
    %179 = tpu.dynamic_rotate %0 by %c224_i32 dim 2 : vector<2x4x256xf32>, i32 -> vector<2x4x256xf32>
    %180 = vector.extract_strided_slice %1 {offsets = [0, 6], sizes = [8, 1], strides = [1, 1]} : vector<8x36xf32> to vector<8x1xf32>
    %181 = vector.extract_strided_slice %179 {offsets = [0, 0, 0], sizes = [2, 1, 256], strides = [1, 1, 1]} : vector<2x4x256xf32> to vector<2x1x256xf32>
    %182 = vector.shape_cast %180 : vector<8x1xf32> to vector<1x8x1xf32>
    %183 = vector.broadcast %181 : vector<2x1x256xf32> to vector<2x8x256xf32>
    %184 = vector.broadcast %182 : vector<1x8x1xf32> to vector<2x8x256xf32>
    %185 = arith.mulf %183, %184 : vector<2x8x256xf32>
    %186 = arith.addf %178, %185 : vector<2x8x256xf32>
    %187 = vector.extract_strided_slice %1 {offsets = [0, 15], sizes = [8, 1], strides = [1, 1]} : vector<8x36xf32> to vector<8x1xf32>
    %188 = vector.extract_strided_slice %179 {offsets = [0, 1, 0], sizes = [2, 1, 256], strides = [1, 1, 1]} : vector<2x4x256xf32> to vector<2x1x256xf32>
    %189 = vector.shape_cast %187 : vector<8x1xf32> to vector<1x8x1xf32>
    %190 = vector.broadcast %188 : vector<2x1x256xf32> to vector<2x8x256xf32>
    %191 = vector.broadcast %189 : vector<1x8x1xf32> to vector<2x8x256xf32>
    %192 = arith.mulf %190, %191 : vector<2x8x256xf32>
    %193 = arith.addf %186, %192 : vector<2x8x256xf32>
    %194 = vector.extract_strided_slice %1 {offsets = [0, 24], sizes = [8, 1], strides = [1, 1]} : vector<8x36xf32> to vector<8x1xf32>
    %195 = vector.extract_strided_slice %179 {offsets = [0, 2, 0], sizes = [2, 1, 256], strides = [1, 1, 1]} : vector<2x4x256xf32> to vector<2x1x256xf32>
    %196 = vector.shape_cast %194 : vector<8x1xf32> to vector<1x8x1xf32>
    %197 = vector.broadcast %195 : vector<2x1x256xf32> to vector<2x8x256xf32>
    %198 = vector.broadcast %196 : vector<1x8x1xf32> to vector<2x8x256xf32>
    %199 = arith.mulf %197, %198 : vector<2x8x256xf32>
    %200 = arith.addf %193, %199 : vector<2x8x256xf32>
    %201 = vector.extract_strided_slice %1 {offsets = [0, 33], sizes = [8, 1], strides = [1, 1]} : vector<8x36xf32> to vector<8x1xf32>
    %202 = vector.extract_strided_slice %179 {offsets = [0, 3, 0], sizes = [2, 1, 256], strides = [1, 1, 1]} : vector<2x4x256xf32> to vector<2x1x256xf32>
    %203 = vector.shape_cast %201 : vector<8x1xf32> to vector<1x8x1xf32>
    %204 = vector.broadcast %202 : vector<2x1x256xf32> to vector<2x8x256xf32>
    %205 = vector.broadcast %203 : vector<1x8x1xf32> to vector<2x8x256xf32>
    %206 = arith.mulf %204, %205 : vector<2x8x256xf32>
    %207 = arith.addf %200, %206 : vector<2x8x256xf32>
    %c223_i32 = arith.constant 223 : i32
    %208 = tpu.dynamic_rotate %0 by %c223_i32 dim 2 : vector<2x4x256xf32>, i32 -> vector<2x4x256xf32>
    %209 = vector.extract_strided_slice %1 {offsets = [0, 7], sizes = [8, 1], strides = [1, 1]} : vector<8x36xf32> to vector<8x1xf32>
    %210 = vector.extract_strided_slice %208 {offsets = [0, 0, 0], sizes = [2, 1, 256], strides = [1, 1, 1]} : vector<2x4x256xf32> to vector<2x1x256xf32>
    %211 = vector.shape_cast %209 : vector<8x1xf32> to vector<1x8x1xf32>
    %212 = vector.broadcast %210 : vector<2x1x256xf32> to vector<2x8x256xf32>
    %213 = vector.broadcast %211 : vector<1x8x1xf32> to vector<2x8x256xf32>
    %214 = arith.mulf %212, %213 : vector<2x8x256xf32>
    %215 = arith.addf %207, %214 : vector<2x8x256xf32>
    %216 = vector.extract_strided_slice %1 {offsets = [0, 16], sizes = [8, 1], strides = [1, 1]} : vector<8x36xf32> to vector<8x1xf32>
    %217 = vector.extract_strided_slice %208 {offsets = [0, 1, 0], sizes = [2, 1, 256], strides = [1, 1, 1]} : vector<2x4x256xf32> to vector<2x1x256xf32>
    %218 = vector.shape_cast %216 : vector<8x1xf32> to vector<1x8x1xf32>
    %219 = vector.broadcast %217 : vector<2x1x256xf32> to vector<2x8x256xf32>
    %220 = vector.broadcast %218 : vector<1x8x1xf32> to vector<2x8x256xf32>
    %221 = arith.mulf %219, %220 : vector<2x8x256xf32>
    %222 = arith.addf %215, %221 : vector<2x8x256xf32>
    %223 = vector.extract_strided_slice %1 {offsets = [0, 25], sizes = [8, 1], strides = [1, 1]} : vector<8x36xf32> to vector<8x1xf32>
    %224 = vector.extract_strided_slice %208 {offsets = [0, 2, 0], sizes = [2, 1, 256], strides = [1, 1, 1]} : vector<2x4x256xf32> to vector<2x1x256xf32>
    %225 = vector.shape_cast %223 : vector<8x1xf32> to vector<1x8x1xf32>
    %226 = vector.broadcast %224 : vector<2x1x256xf32> to vector<2x8x256xf32>
    %227 = vector.broadcast %225 : vector<1x8x1xf32> to vector<2x8x256xf32>
    %228 = arith.mulf %226, %227 : vector<2x8x256xf32>
    %229 = arith.addf %222, %228 : vector<2x8x256xf32>
    %230 = vector.extract_strided_slice %1 {offsets = [0, 34], sizes = [8, 1], strides = [1, 1]} : vector<8x36xf32> to vector<8x1xf32>
    %231 = vector.extract_strided_slice %208 {offsets = [0, 3, 0], sizes = [2, 1, 256], strides = [1, 1, 1]} : vector<2x4x256xf32> to vector<2x1x256xf32>
    %232 = vector.shape_cast %230 : vector<8x1xf32> to vector<1x8x1xf32>
    %233 = vector.broadcast %231 : vector<2x1x256xf32> to vector<2x8x256xf32>
    %234 = vector.broadcast %232 : vector<1x8x1xf32> to vector<2x8x256xf32>
    %235 = arith.mulf %233, %234 : vector<2x8x256xf32>
    %236 = arith.addf %229, %235 : vector<2x8x256xf32>
    %c222_i32 = arith.constant 222 : i32
    %237 = tpu.dynamic_rotate %0 by %c222_i32 dim 2 : vector<2x4x256xf32>, i32 -> vector<2x4x256xf32>
    %238 = vector.extract_strided_slice %1 {offsets = [0, 8], sizes = [8, 1], strides = [1, 1]} : vector<8x36xf32> to vector<8x1xf32>
    %239 = vector.extract_strided_slice %237 {offsets = [0, 0, 0], sizes = [2, 1, 256], strides = [1, 1, 1]} : vector<2x4x256xf32> to vector<2x1x256xf32>
    %240 = vector.shape_cast %238 : vector<8x1xf32> to vector<1x8x1xf32>
    %241 = vector.broadcast %239 : vector<2x1x256xf32> to vector<2x8x256xf32>
    %242 = vector.broadcast %240 : vector<1x8x1xf32> to vector<2x8x256xf32>
    %243 = arith.mulf %241, %242 : vector<2x8x256xf32>
    %244 = arith.addf %236, %243 : vector<2x8x256xf32>
    %245 = vector.extract_strided_slice %1 {offsets = [0, 17], sizes = [8, 1], strides = [1, 1]} : vector<8x36xf32> to vector<8x1xf32>
    %246 = vector.extract_strided_slice %237 {offsets = [0, 1, 0], sizes = [2, 1, 256], strides = [1, 1, 1]} : vector<2x4x256xf32> to vector<2x1x256xf32>
    %247 = vector.shape_cast %245 : vector<8x1xf32> to vector<1x8x1xf32>
    %248 = vector.broadcast %246 : vector<2x1x256xf32> to vector<2x8x256xf32>
    %249 = vector.broadcast %247 : vector<1x8x1xf32> to vector<2x8x256xf32>
    %250 = arith.mulf %248, %249 : vector<2x8x256xf32>
    %251 = arith.addf %244, %250 : vector<2x8x256xf32>
    %252 = vector.extract_strided_slice %1 {offsets = [0, 26], sizes = [8, 1], strides = [1, 1]} : vector<8x36xf32> to vector<8x1xf32>
    %253 = vector.extract_strided_slice %237 {offsets = [0, 2, 0], sizes = [2, 1, 256], strides = [1, 1, 1]} : vector<2x4x256xf32> to vector<2x1x256xf32>
    %254 = vector.shape_cast %252 : vector<8x1xf32> to vector<1x8x1xf32>
    %255 = vector.broadcast %253 : vector<2x1x256xf32> to vector<2x8x256xf32>
    %256 = vector.broadcast %254 : vector<1x8x1xf32> to vector<2x8x256xf32>
    %257 = arith.mulf %255, %256 : vector<2x8x256xf32>
    %258 = arith.addf %251, %257 : vector<2x8x256xf32>
    %259 = vector.extract_strided_slice %1 {offsets = [0, 35], sizes = [8, 1], strides = [1, 1]} : vector<8x36xf32> to vector<8x1xf32>
    %260 = vector.extract_strided_slice %237 {offsets = [0, 3, 0], sizes = [2, 1, 256], strides = [1, 1, 1]} : vector<2x4x256xf32> to vector<2x1x256xf32>
    %261 = vector.shape_cast %259 : vector<8x1xf32> to vector<1x8x1xf32>
    %262 = vector.broadcast %260 : vector<2x1x256xf32> to vector<2x8x256xf32>
    %263 = vector.broadcast %261 : vector<1x8x1xf32> to vector<2x8x256xf32>
    %264 = arith.mulf %262, %263 : vector<2x8x256xf32>
    %265 = arith.addf %258, %264 : vector<2x8x256xf32>
    %c0_6 = arith.constant 0 : index
    %c0_7 = arith.constant 0 : index
    %c0_8 = arith.constant 0 : index
    %266 = vector.load %arg4[%c0_6, %c0_7, %c0_8] : memref<2x8x256xf32, #tpu.memory_space<vmem>>, vector<2x8x256xf32>
    tpu.vector_store %arg4[%c0_6, %c0_7, %c0_8], %265 {strides = array<i32>} : memref<2x8x256xf32, #tpu.memory_space<vmem>>, vector<2x8x256xf32>,
    return
  }
  func.func @transform_0(%arg0: i32) -> (i32, i32, i32) {
    %c0_i32 = arith.constant 0 : i32
    %c0_i32_0 = arith.constant 0 : i32
    %c0_i32_1 = arith.constant 0 : i32
    return %arg0, %c0_i32, %c0_i32_0 : i32, i32, i32
  }
  func.func @transform_1(%arg0: i32) -> (i32, i32) {
    %c0_i32 = arith.constant 0 : i32
    %c0_i32_0 = arith.constant 0 : i32
    %c0_i32_1 = arith.constant 0 : i32
    return %c0_i32, %c0_i32_0 : i32, i32
  }
  func.func @transform_2(%arg0: i32) -> (i32, i32) {
    %c0_i32 = arith.constant 0 : i32
    %c0_i32_0 = arith.constant 0 : i32
    %c0_i32_1 = arith.constant 0 : i32
    return %c0_i32, %c0_i32_0 : i32, i32
  }
  func.func @transform_3(%arg0: i32) -> (i32, i32, i32) {
    %c0_i32 = arith.constant 0 : i32
    %c0_i32_0 = arith.constant 0 : i32
    %c0_i32_1 = arith.constant 0 : i32
    return %arg0, %c0_i32, %c0_i32_0 : i32, i32, i32
  }
}

</mosaic_0001>

<bundles_post_ra>
// kernel: tpu_custom_call.1
= control target key start
LH: loop header
LB: loop body
LE: loop exit
PB: predicated region body
PF: predicated region fallthrough
CT: control target
= control target key end

     0   :  { %8 = vsyncpa [#allocation3], 0  ;;  %s1517_s0 = inlined_call_operand.hbm [shape: f32[2,4,256], index: 0, kind: input, shape index: {}]   ;;  %s1518_s1 = inlined_call_operand.vmem [shape: f32[8,36], index: 1, kind: input, shape index: {}]   ;;  %s1519_s2 = inlined_call_operand.vmem [shape: f32[8,1], index: 2, kind: input, shape index: {}]   ;;  %s1520_s3 = inlined_call_operand.hbm [shape: f32[2,8,256], index: 3, kind: output, shape index: {}]  }
   0x1   :  { %9 = vsyncpa [#allocation4], 0  ;;  %s14_s14 = sshll.u32 %s1517_s0, 4  ;;  %s1007_s15 = smov [#allocation2]   ;;  %s15_s14 = int_to_ptr.hbm [resolvable:$true] %s14_s14 }
   0x2   :  { %s16_s16 = sshll.u32 %s1007_s15, 4  ;;  %s1008_s17 = smov 128   ;;  %s17_s16 = int_to_ptr.vmem [resolvable:$true] %s16_s16 }
   0x3   :  { %s1009_s18 = smov 8  }
   0x4   :  { %22 = dma.hbm_to_vmem [thread:$0]  %s15_s14, 256, %s17_s16, [#allocation3], %s1008_s17, %s1008_s17, %s1009_s18  }
   0x5   :  { %1003 = dma.done.wait [#allocation3], 256  }
   0x6   :  { %1004 = vsyncadd [#allocation3], 4294967040  ;;  %v1010_v0 = vmov 9   ;;  %v1011_v1 = vmov 0   ;;  %v1012_v2 = vmov 27   ;;  %v34_v3 = vld [vmem:[%s1519_s2] sm:$0xff] }
   0x7   :  { %919 = vset.pattern.permute.xlu1 %v1010_v0  ;;  %918 = vset.pattern.permute.xlu0 %v1011_v1  ;;  %v1086_v4 = vld [vmem:[%s1518_s1] sm:$0xff]  ;;  %v1088_v5 = vld [vmem:[#allocation2 + $0x8] sm:$0xff]  ;;  %v1092_v6 = vld [vmem:[#allocation2] sm:$0xff]  ;;  %v1013_v8 = vmov 18   ;;  %s1014_s1 = smov 127   ;;  %v1015_v12 = vmov 19  }
   0x8   :  { %921 = vset.pattern.permute.xlu2 %v1012_v2  ;;  %37 = vperm.xlu0 %918, %v34_v3   ;;  %143 = vst [vmem:[#allocation1 + $0x10] ss:$2 sm:$0xff] %v1088_v5  ;;  %v1016_v15 = vmov 1   ;;  %v1017_v16 = vmov 10   ;;  %s1018_s2 = smov 126   ;;  %v1019_v21 = vmov 28  }
   0x9   :  { %80 = vperm.xlu1 %919, %v1086_v4   ;;  %128 = vperm.xlu2 %921, %v1086_v4   ;;  %139 = vst [vmem:[#allocation1] ss:$2 sm:$0xff] %v1092_v6  ;;  %v1020_v22 = vmov 2   ;;  %v1021_v23 = vmov 20   ;;  %v1022_v26 = vmov 11   ;;  %s1023_s22 = smov 112  }
   0xa   :  { %v1024_v27 = vmov 3   ;;  %v1025_v30 = vmov 29   ;;  %v1026_v31 = vmov 21   ;;  %s1027_s23 = smov 111   ;;  %v1028_v34 = vmov 4   ;;  %s1030_s24 = smov 110  }
   0xb   :  { %v1029_v35 = vmov 12   ;;  %v1031_v37 = vmov 5   ;;  %v1032_v38 = vmov 30   ;;  %v1033_v39 = vmov 22   ;;  %s1035_s25 = smov 96   ;;  %s1040_s26 = smov 95  }
   0xc   :  { %v1034_v44 = vmov 13   ;;  %v1036_v47 = vmov 23   ;;  %v1037_v48 = vmov 6   ;;  %v1038_v49 = vmov 31   ;;  %s1045_s27 = smov 94   ;;  %s1054_s28 = smov [#allocation5]  }
   0xd   :  { %v115_v53 = vperm.slane %v1092_v6, 3  ;;  %v116_v54 = vperm.slane %v1092_v6, 7  ;;  %v117_v55 = vperm.slane %v1088_v5, 3  ;;  %v118_v56 = vperm.slane %v1088_v5, 7  ;;  %s853_s29 = sshll.u32 %s1054_s28, 4  ;;  %s855_s5 = sshll.u32 %s1520_s3, 4  ;;  %s854_s29 = int_to_ptr.vmem [resolvable:$true] %s853_s29  ;;  %s856_s5 = int_to_ptr.hbm [resolvable:$true] %s855_s5 }
   0xe   :  { %v67_v59 = vperm.slane %v1092_v6, 1  ;;  %v42_v60 = vperm.slane %v1092_v6, 0  ;;  %v43_v61 = vperm.slane %v1092_v6, 4  ;;  %v44_v62 = vperm.slane %v1088_v5, 0  ;;  %s1055_s6 = smov 256   ;;  %s1056_s7 = smov 16  }
   0xf   :  { %v145_v7 = vld.sshfl [vmem:[#allocation1 + $0x18] sm:$0xff pattern:$0x75316420]  ;;  %v144_v11 = vld.sshfl [vmem:[#allocation1 + $0x10] sm:$0xff pattern:$0x75316420] }
  0x10   :  { %56 = vperm.xlu0 %918, %v1086_v4   ;;  %v141_v9 = vld.sshfl [vmem:[#allocation1 + $0x8] sm:$0xff pattern:$0x75316420]  ;;  %v140_v10 = vld.sshfl [vmem:[#allocation1] sm:$0xff pattern:$0x75316420] }
  0x11   :  { %920 = vset.pattern.permute.xlu1 %v1013_v8  ;;  %150 = vrot.lane.b32.xlu2 %v140_v10, %s1014_s1  ;;  %229 = vst [vmem:[#allocation1] ss:$2 sm:$0xff] %v1092_v6  ;;  %v45_v63 = vperm.slane %v1088_v5, 4  ;;  %v68_v0 = vperm.slane %v1092_v6, 5  ;;  %v69_v1 = vperm.slane %v1088_v5, 1  ;;  %v70_v2 = vperm.slane %v1088_v5, 5 }
  0x12   :  { %104 = vperm.xlu1 %920, %v1086_v4   ;;  %233 = vst [vmem:[#allocation1 + $0x10] ss:$2 sm:$0xff] %v1088_v5  ;;  %924 = vset.pattern.permute.xlu2 %v1015_v12  ;;  %v123_v8 = vperm.slane %v115_v53, 3  ;;  %v92_v10 = vperm.slane %v1092_v6, 6  ;;  %v124_v12 = vperm.slane %v116_v54, 3 }
  0x18   :  { %152 = vrot.lane.b32.xlu0 %v144_v11, %s1014_s1  ;;  %v231_v13 = vld.sshfl [vmem:[#allocation1 + $0x8] sm:$0xff pattern:$0x75316420]  ;;  %v230_v14 = vld.sshfl [vmem:[#allocation1] sm:$0xff pattern:$0x75316420] }
  0x19   :  { %922 = vset.pattern.permute.xlu0 %v1016_v15  ;;  %317 = vst [vmem:[#allocation1] ss:$2 sm:$0xff] %v1092_v6  ;;  %156 = vrot.lane.b32.xlu2 %v145_v7, %s1014_s1  ;;  %v234_v17 = vld.sshfl [vmem:[#allocation1 + $0x10] sm:$0xff pattern:$0x75316420]  ;;  %v93_v11 = vperm.slane %v1088_v5, 2 }
  0x1a   :  { %154 = vrot.lane.b32.xlu1 %v141_v9, %s1014_s1  ;;  %v235_v18 = vld.sshfl [vmem:[#allocation1 + $0x18] sm:$0xff pattern:$0x75316420]  ;;  %v91_v9 = vperm.slane %v1092_v6, 2  ;;  %v1039_v15 = vmov 14  }
  0x1b   :  { %923 = vset.pattern.permute.xlu1 %v1017_v16  ;;  %321 = vst [vmem:[#allocation1 + $0x10] ss:$2 sm:$0xff] %v1088_v5  ;;  %v158_v16 = vlaneseq }
  0x20   :  { %170 = vperm.xlu0 %922, %v1086_v4   ;;  %v318_v19 = vld.sshfl [vmem:[#allocation1] sm:$0xff pattern:$0x75316420]  ;;  %v319_v20 = vld.sshfl [vmem:[#allocation1 + $0x8] sm:$0xff pattern:$0x75316420] }
  0x21   :  { %202 = vperm.xlu2 %924, %v1086_v4   ;;  %405 = vst [vmem:[#allocation1] ss:$2 sm:$0xff] %v1092_v6 }
  0x22   :  { %186 = vperm.xlu1 %923, %v1086_v4   ;;  %v322_v24 = vld.sshfl [vmem:[#allocation1 + $0x10] sm:$0xff pattern:$0x75316420]  ;;  %v323_v25 = vld.sshfl [vmem:[#allocation1 + $0x18] sm:$0xff pattern:$0x75316420] }
  0x23   :  { %409 = vst [vmem:[#allocation1 + $0x10] ss:$2 sm:$0xff] %v1088_v5 }
  0x28   :  { %242 = vrot.lane.b32.xlu0 %v234_v17, %s1018_s2  ;;  %v406_v28 = vld.sshfl [vmem:[#allocation1] sm:$0xff pattern:$0x75316420]  ;;  %v407_v29 = vld.sshfl [vmem:[#allocation1 + $0x8] sm:$0xff pattern:$0x75316420] }
  0x29   :  { %926 = vset.pattern.permute.xlu0 %v1020_v22  ;;  %240 = vrot.lane.b32.xlu2 %v230_v14, %s1018_s2  ;;  %493 = vst [vmem:[#allocation1] ss:$2 sm:$0xff] %v1092_v6  ;;  %v94_v14 = vperm.slane %v1088_v5, 6  ;;  %v50_v17 = vperm.slane %v42_v60, 0  ;;  %v76_v22 = vperm.slane %v68_v0, 1 }
  0x2a   :  { %925 = vset.pattern.permute.xlu1 %v1019_v21  ;;  %928 = vset.pattern.permute.xlu2 %v1021_v23  ;;  %v410_v32 = vld.sshfl [vmem:[#allocation1 + $0x10] sm:$0xff pattern:$0x75316420]  ;;  %v411_v33 = vld.sshfl [vmem:[#allocation1 + $0x18] sm:$0xff pattern:$0x75316420] }
  0x2b   :  { %218 = vperm.xlu1 %925, %v1086_v4   ;;  %497 = vst [vmem:[#allocation1 + $0x10] ss:$2 sm:$0xff] %v1088_v5  ;;  %v75_v21 = vperm.slane %v67_v59, 1  ;;  %v77_v23 = vperm.slane %v69_v1, 1 }
  0x30   :  { %258 = vperm.xlu0 %926, %v1086_v4   ;;  %v494_v40 = vld.sshfl [vmem:[#allocation1] sm:$0xff pattern:$0x75316420]  ;;  %v495_v41 = vld.sshfl [vmem:[#allocation1 + $0x8] sm:$0xff pattern:$0x75316420] }
  0x31   :  { %246 = vrot.lane.b32.xlu2 %v235_v18, %s1018_s2  ;;  %581 = vst [vmem:[#allocation1] ss:$2 sm:$0xff] %v1092_v6  ;;  %v51_v18 = vperm.slane %v43_v61, 0 }
  0x32   :  { %v498_v36 = vld.sshfl [vmem:[#allocation1 + $0x10] sm:$0xff pattern:$0x75316420]  ;;  %v499_v42 = vld.sshfl [vmem:[#allocation1 + $0x18] sm:$0xff pattern:$0x75316420] }
  0x33   :  { %244 = vrot.lane.b32.xlu1 %v231_v13, %s1018_s2  ;;  %585 = vst [vmem:[#allocation1 + $0x10] ss:$2 sm:$0xff] %v1088_v5  ;;  %v125_v13 = vperm.slane %v117_v55, 3 }
  0x34   :  { %927 = vset.pattern.permute.xlu1 %v1022_v26  ;;  %v99_v26 = vperm.slane %v91_v9, 2 }
  0x38   :  { %330 = vrot.lane.b32.xlu0 %v322_v24, %s1023_s22  ;;  %v1135_v51 = vld.sshfl [vmem:[#allocation1] sm:$0xff pattern:$0x75316420]  ;;  %v1137_v52 = vld.sshfl [vmem:[#allocation1 + $0x8] sm:$0xff pattern:$0x75316420] }
  0x39   :  { %930 = vset.pattern.permute.xlu0 %v1024_v27  ;;  %290 = vperm.xlu2 %928, %v1086_v4   ;;  %669 = vst [vmem:[#allocation1] ss:$2 sm:$0xff] %v1092_v6  ;;  %v78_v24 = vperm.slane %v70_v2, 1  ;;  %v100_v27 = vperm.slane %v92_v10, 2 }
  0x3a   :  { %v586_v45 = vld.sshfl [vmem:[#allocation1 + $0x10] sm:$0xff pattern:$0x75316420]  ;;  %v1155_v7 = vld.sshfl [vmem:[#allocation1 + $0x18] sm:$0xff pattern:$0x75316420] }
  0x3b   :  { %274 = vperm.xlu1 %927, %v1086_v4   ;;  %673 = vst [vmem:[#allocation1 + $0x10] ss:$2 sm:$0xff] %v1088_v5 }
  0x40   :  { %346 = vperm.xlu0 %930, %v1086_v4  }
  0x41   :  { %328 = vrot.lane.b32.xlu2 %v318_v19, %s1023_s22  ;;  %v52_v19 = vperm.slane %v44_v62, 0 }
  0x42   :  { %932 = vset.pattern.permute.xlu2 %v1026_v31 }
  0x43   :  { %929 = vset.pattern.permute.xlu1 %v1025_v30 }
  0x44   :  { %306 = vperm.xlu1 %929, %v1086_v4  }
  0x48   :  { %418 = vrot.lane.b32.xlu0 %v410_v32, %s1027_s23  ;;  %v102_v32 = vperm.slane %v94_v14, 2  ;;  %v1041_v14 = vmov 24  }
  0x49   :  { %934 = vset.pattern.permute.xlu0 %v1028_v34  ;;  %334 = vrot.lane.b32.xlu2 %v323_v25, %s1023_s22  ;;  %v126_v25 = vperm.slane %v118_v56, 3 }
  0x4c   :  { %332 = vrot.lane.b32.xlu1 %v319_v20, %s1023_s22  ;;  %v53_v20 = vperm.slane %v45_v63, 0 }
  0x4d   :  { %931 = vset.pattern.permute.xlu1 %v1029_v35 }
  0x50   :  { %434 = vperm.xlu0 %934, %v1086_v4  }
  0x51   :  { %378 = vperm.xlu2 %932, %v1086_v4  }
  0x54   :  { %362 = vperm.xlu1 %931, %v1086_v4  }
  0x58   :  { %506 = vrot.lane.b32.xlu0 %v498_v36, %s1030_s24 }
  0x59   :  { %938 = vset.pattern.permute.xlu0 %v1031_v37  ;;  %416 = vrot.lane.b32.xlu2 %v406_v28, %s1027_s23  ;;  %v101_v28 = vperm.slane %v93_v11, 2 }
  0x5a   :  { %936 = vset.pattern.permute.xlu2 %v1033_v39 }
  0x5c   :  { %933 = vset.pattern.permute.xlu1 %v1032_v38 }
  0x5d   :  { %394 = vperm.xlu1 %933, %v1086_v4  }
  0x60   :  { %522 = vperm.xlu0 %938, %v1086_v4  }
  0x61   :  { %422 = vrot.lane.b32.xlu2 %v411_v33, %s1027_s23  ;;  %v1165_v33 = vand.u32 127, %v158_v16  ;;  %v1042_v16 = vmov 7  }
  0x63   :  { %v1123_v43 = vpop.permute.xlu2 %128  ;;  %vm160_vm0 = vcmp.lt.s32.totalorder %v1165_v33, 127  ;;  %vm248_vm1 = vcmp.lt.s32.totalorder %v1165_v33, 126  ;;  %vm336_vm2 = vcmp.lt.s32.totalorder %v1165_v33, 112  ;;  %vm424_vm3 = vcmp.lt.s32.totalorder %v1165_v33, 111 }
  0x64   :  { %v132_v30 = vmul.f32 %v1123_v43, %v124_v12  ;;  %v133_v63 = vmul.f32 %v1123_v43, %v125_v13  ;;  %vm512_vm4 = vcmp.lt.s32.totalorder %v1165_v33, 110  ;;  %vm600_vm5 = vcmp.lt.s32.totalorder %v1165_v33, 96 }
  0x65   :  { %420 = vrot.lane.b32.xlu1 %v407_v29, %s1027_s23  ;;  %v131_v29 = vmul.f32 %v1123_v43, %v123_v8  ;;  %vm688_vm6 = vcmp.lt.s32.totalorder %v1165_v33, 95  ;;  %vm776_vm7 = vcmp.lt.s32.totalorder %v1165_v33, 94 }
  0x66   :  { %935 = vset.pattern.permute.xlu1 %v1034_v44 }
  0x68   :  { %594 = vrot.lane.b32.xlu0 %v586_v45, %s1035_s25  ;;  %v674_v45 = vld.sshfl [vmem:[#allocation1 + $0x10] sm:$0xff pattern:$0x75316420] }
  0x69   :  { %466 = vperm.xlu2 %936, %v1086_v4   ;;  %942 = vset.pattern.permute.xlu0 %v1037_v48 }
  0x6b   :  { %v1127_v46 = vpop.permute.xlu2 %150 }
  0x6d   :  { %450 = vperm.xlu1 %935, %v1086_v4  }
  0x70   :  { %610 = vperm.xlu0 %942, %v1086_v4  }
  0x71   :  { %504 = vrot.lane.b32.xlu2 %v494_v40, %s1030_s24 }
  0x72   :  { %940 = vset.pattern.permute.xlu2 %v1036_v47 }
  0x73   :  { %v1131_v50 = vpop.permute.xlu2 %156 }
  0x75   :  { %937 = vset.pattern.permute.xlu1 %v1038_v49 }
  0x76   :  { %482 = vperm.xlu1 %937, %v1086_v4  }
  0x78   :  { %682 = vrot.lane.b32.xlu0 %v674_v45, %s1040_s26 }
  0x79   :  { %510 = vrot.lane.b32.xlu2 %v499_v42, %s1030_s24  ;;  %946 = vset.pattern.permute.xlu0 %v1042_v16 }
  0x7a   :  { %v38_v57 = vpop.permute.xlu0 %37 }
  0x7b   :  { %v81_v58 = vpop.permute.xlu1 %80  ;;  %v1153_v3 = vpop.permute.xlu2 %202 }
  0x7c   :  { %v83_v39 = vmul.f32 %v81_v58, %v75_v21  ;;  %v84_v40 = vmul.f32 %v81_v58, %v76_v22  ;;  %v86_v42 = vmul.f32 %v81_v58, %v78_v24  ;;  %v1202_v22 = vld.sshfl [vmem:[#allocation1] sm:$0xff pattern:$0x75316420] }
  0x7e   :  { %508 = vrot.lane.b32.xlu1 %v495_v41, %s1030_s24  ;;  %v85_v41 = vmul.f32 %v81_v58, %v77_v23 }
  0x7f   :  { %939 = vset.pattern.permute.xlu1 %v1039_v15 }
  0x80   :  { %698 = vperm.xlu0 %946, %v1086_v4  }
  0x81   :  { %554 = vperm.xlu2 %940, %v1086_v4  }
  0x82   :  { %v57_v31 = vpop.permute.xlu0 %56 }
  0x83   :  { %v59_v34 = vmul.f32 %v57_v31, %v50_v17  ;;  %v60_v35 = vmul.f32 %v57_v31, %v51_v18  ;;  %v61_v36 = vmul.f32 %v57_v31, %v52_v19  ;;  %v62_v37 = vmul.f32 %v57_v31, %v53_v20  ;;  %v1168_v44 = vpop.permute.xlu2 %240 }
  0x84   :  { %v105_v38 = vpop.permute.xlu1 %104  ;;  %v1043_v18 = vmov 32  }
  0x85   :  { %v63_v47 = vadd.f32 %v59_v34, %v38_v57  ;;  %v64_v48 = vadd.f32 %v60_v35, %v38_v57  ;;  %v65_v49 = vadd.f32 %v61_v36, %v38_v57  ;;  %v66_v53 = vadd.f32 %v62_v37, %v38_v57  ;;  %v1218_v34 = vld.sshfl [vmem:[#allocation1 + $0x18] sm:$0xff pattern:$0x75316420] }
  0x86   :  { %538 = vperm.xlu1 %939, %v1086_v4   ;;  %v107_v54 = vmul.f32 %v105_v38, %v99_v26  ;;  %v108_v55 = vmul.f32 %v105_v38, %v100_v27  ;;  %v109_v56 = vmul.f32 %v105_v38, %v101_v28  ;;  %v110_v59 = vmul.f32 %v105_v38, %v102_v32  ;;  %v1209_v27 = vld.sshfl [vmem:[#allocation1 + $0x8] sm:$0xff pattern:$0x75316420] }
  0x87   :  { %v87_v60 = vadd.f32 %v83_v39, %v63_v47  ;;  %v88_v61 = vadd.f32 %v84_v40, %v64_v48  ;;  %v89_v62 = vadd.f32 %v85_v41, %v65_v49  ;;  %v90_v58 = vadd.f32 %v86_v42, %v66_v53  ;;  %757 = vst [vmem:[#allocation1] ss:$2 sm:$0xff] %v1092_v6 }
  0x88   :  { %v134_v57 = vmul.f32 %v1123_v43, %v126_v25  ;;  %761 = vst [vmem:[#allocation1 + $0x10] ss:$2 sm:$0xff] %v1088_v5 }
  0x89   :  { %v111_v0 = vadd.f32 %v107_v54, %v87_v60  ;;  %v112_v1 = vadd.f32 %v108_v55, %v88_v61  ;;  %v113_v2 = vadd.f32 %v109_v56, %v89_v62  ;;  %v114_v8 = vadd.f32 %v110_v59, %v90_v58  ;;  %592 = vrot.lane.b32.xlu2 %v1135_v51, %s1035_s25 }
  0x8a   :  { %v153_v9 = vpop.permute.xlu0 %152  ;;  %944 = vset.pattern.permute.xlu2 %v1041_v14  ;;  %v1044_v62 = vmov 15  }
  0x8b   :  { %v1180_v10 = vsel %vm160_vm0, %v1131_v50, %v153_v9  ;;  %v135_v12 = vadd.f32 %v131_v29, %v111_v0  ;;  %v136_v13 = vadd.f32 %v132_v30, %v112_v1  ;;  %v1185_v43 = vsel %vm160_vm0, %v153_v9, %v1131_v50  ;;  %v1187_v15 = vpop.permute.xlu2 %246 }
  0x8c   :  { %v155_v11 = vpop.permute.xlu1 %154  ;;  %v199_v51 = vperm.slane %v1185_v43, 2  ;;  %v200_v17 = vperm.slane %v1180_v10, 2  ;;  %v137_v20 = vadd.f32 %v133_v63, %v113_v2  ;;  %v138_v21 = vadd.f32 %v134_v57, %v114_v8 }
  0x8d   :  { %v1194_v19 = vsel %vm160_vm0, %v1127_v46, %v155_v11  ;;  %v1199_v50 = vsel %vm160_vm0, %v155_v11, %v1127_v46  ;;  %v167_v23 = vperm.slane %v1185_v43, 0  ;;  %v168_v24 = vperm.slane %v1180_v10, 0 }
  0x8e   :  { %941 = vset.pattern.permute.xlu1 %v1043_v18  ;;  %v207_v25 = vmul.f32 %v1153_v3, %v199_v51  ;;  %v208_v26 = vmul.f32 %v1153_v3, %v200_v17  ;;  %v183_v46 = vperm.slane %v1185_v43, 1  ;;  %v184_v28 = vperm.slane %v1180_v10, 1  ;;  %v759_v8 = vld.sshfl [vmem:[#allocation1 + $0x8] sm:$0xff pattern:$0x75316420] }
  0x8f   :  { %570 = vperm.xlu1 %941, %v1086_v4   ;;  %v197_v29 = vperm.slane %v1194_v19, 2  ;;  %v198_v30 = vperm.slane %v1199_v50, 2  ;;  %v165_v31 = vperm.slane %v1194_v19, 0  ;;  %v166_v32 = vperm.slane %v1199_v50, 0  ;;  %772 = vrot.lane.b32.xlu0 %v759_v8, %s1045_s27 }
  0x90   :  { %v181_v35 = vperm.slane %v1194_v19, 1  ;;  %v182_v36 = vperm.slane %v1199_v50, 1  ;;  %v215_v57 = vperm.slane %v1185_v43, 3  ;;  %v213_v9 = vperm.slane %v1194_v19, 3 }
  0x91   :  { %v205_v37 = vmul.f32 %v1153_v3, %v197_v29  ;;  %v206_v38 = vmul.f32 %v1153_v3, %v198_v30  ;;  %598 = vrot.lane.b32.xlu2 %v1155_v7, %s1035_s25  ;;  %v214_v11 = vperm.slane %v1199_v50, 3  ;;  %v1046_v30 = vmov 25  }
  0x92   :  { %v171_v39 = vpop.permute.xlu0 %170 }
  0x93   :  { %v173_v6 = vmul.f32 %v171_v39, %v165_v31  ;;  %v174_v40 = vmul.f32 %v171_v39, %v166_v32  ;;  %v175_v41 = vmul.f32 %v171_v39, %v167_v23  ;;  %v176_v42 = vmul.f32 %v171_v39, %v168_v24  ;;  %v1227_v54 = vpop.permute.xlu2 %290 }
  0x94   :  { %v187_v45 = vpop.permute.xlu1 %186  ;;  %v1047_v31 = vmov 8  }
  0x95   :  { %v189_v47 = vmul.f32 %v187_v45, %v181_v35  ;;  %v190_v48 = vmul.f32 %v187_v45, %v182_v36  ;;  %v191_v49 = vmul.f32 %v187_v45, %v183_v46  ;;  %v192_v53 = vmul.f32 %v187_v45, %v184_v28  ;;  %950 = vset.pattern.permute.xlu0 %v1047_v31 }
  0x96   :  { %v177_v55 = vadd.f32 %v173_v6, %v135_v12  ;;  %v178_v56 = vadd.f32 %v174_v40, %v136_v13  ;;  %v179_v3 = vadd.f32 %v175_v41, %v137_v20  ;;  %v180_v59 = vadd.f32 %v176_v42, %v138_v21 }
  0x97   :  { %596 = vrot.lane.b32.xlu1 %v1137_v52, %s1035_s25  ;;  %v216_v52 = vperm.slane %v1180_v10, 3  ;;  %786 = vperm.xlu0 %950, %v1086_v4   ;;  %v1048_v40 = vmov 33  }
  0x98   :  { %v193_v7 = vadd.f32 %v189_v47, %v177_v55  ;;  %v194_v5 = vadd.f32 %v190_v48, %v178_v56  ;;  %v195_v60 = vadd.f32 %v191_v49, %v179_v3  ;;  %v196_v61 = vadd.f32 %v192_v53, %v180_v59  ;;  %943 = vset.pattern.permute.xlu1 %v1044_v62 }
  0x99   :  { %642 = vperm.xlu2 %944, %v1086_v4  }
  0x9a   :  { %v209_v58 = vadd.f32 %v205_v37, %v193_v7  ;;  %v210_v63 = vadd.f32 %v206_v38, %v194_v5  ;;  %v211_v0 = vadd.f32 %v207_v25, %v195_v60  ;;  %v212_v1 = vadd.f32 %v208_v26, %v196_v61  ;;  %v243_v2 = vpop.permute.xlu0 %242 }
  0x9b   :  { %v1241_v12 = vsel %vm248_vm1, %v243_v2, %v1187_v15  ;;  %v1246_v13 = vsel %vm248_vm1, %v1187_v15, %v243_v2  ;;  %v1248_v43 = vpop.permute.xlu2 %328 }
  0x9c   :  { %v287_v10 = vperm.slane %v1241_v12, 2  ;;  %v288_v16 = vperm.slane %v1246_v13, 2  ;;  %v255_v50 = vperm.slane %v1241_v12, 0  ;;  %v256_v20 = vperm.slane %v1246_v13, 0 }
  0x9d   :  { %v219_v14 = vpop.permute.xlu1 %218  ;;  %v271_v48 = vperm.slane %v1241_v12, 1  ;;  %v272_v49 = vperm.slane %v1246_v13, 1 }
  0x9e   :  { %v221_v51 = vmul.f32 %v219_v14, %v213_v9  ;;  %v222_v17 = vmul.f32 %v219_v14, %v214_v11  ;;  %v223_v18 = vmul.f32 %v219_v14, %v215_v57  ;;  %v224_v19 = vmul.f32 %v219_v14, %v216_v52 }
  0x9f   :  { %626 = vperm.xlu1 %943, %v1086_v4   ;;  %v1256_v15 = vmul.f32 %v1227_v54, %v287_v10  ;;  %v1259_v21 = vmul.f32 %v1227_v54, %v288_v16  ;;  %v1049_v16 = vmov 16  }
  0xa0   :  { %v225_v23 = vadd.f32 %v221_v51, %v209_v58  ;;  %v226_v24 = vadd.f32 %v222_v17, %v210_v63  ;;  %v227_v25 = vadd.f32 %v223_v18, %v211_v0  ;;  %v228_v26 = vadd.f32 %v224_v19, %v212_v1 }
  0xa1   :  { %680 = vrot.lane.b32.xlu2 %v1202_v22, %s1040_s26 }
  0xa2   :  { %v259_v46 = vpop.permute.xlu0 %258  ;;  %948 = vset.pattern.permute.xlu2 %v1046_v30 }
  0xa3   :  { %v263_v28 = vmul.f32 %v259_v46, %v255_v50  ;;  %v264_v29 = vmul.f32 %v259_v46, %v256_v20  ;;  %v335_v35 = vpop.permute.xlu2 %334  ;;  %v304_v20 = vperm.slane %v1246_v13, 3 }
  0xa5   :  { %v245_v32 = vpop.permute.xlu1 %244  ;;  %v267_v36 = vadd.f32 %v263_v28, %v227_v25  ;;  %v268_v37 = vadd.f32 %v264_v29, %v228_v26 }
  0xa6   :  { %v249_v38 = vsel %vm248_vm1, %v1168_v44, %v245_v32  ;;  %v251_v22 = vsel %vm248_vm1, %v245_v32, %v1168_v44 }
  0xa7   :  { %v253_v39 = vperm.slane %v249_v38, 0  ;;  %v254_v6 = vperm.slane %v251_v22, 0  ;;  %945 = vset.pattern.permute.xlu1 %v1048_v40  ;;  %v285_v41 = vperm.slane %v249_v38, 2  ;;  %v286_v42 = vperm.slane %v251_v22, 2 }
  0xa8   :  { %658 = vperm.xlu1 %945, %v1086_v4   ;;  %v269_v59 = vperm.slane %v249_v38, 1  ;;  %v270_v7 = vperm.slane %v251_v22, 1 }
  0xa9   :  { %v261_v45 = vmul.f32 %v259_v46, %v253_v39  ;;  %v262_v47 = vmul.f32 %v259_v46, %v254_v6  ;;  %v293_v53 = vmul.f32 %v1227_v54, %v285_v41  ;;  %v294_v44 = vmul.f32 %v1227_v54, %v286_v42  ;;  %686 = vrot.lane.b32.xlu2 %v1218_v34, %s1040_s26  ;;  %v758_v39 = vld.sshfl [vmem:[#allocation1] sm:$0xff pattern:$0x75316420] }
  0xaa   :  { %v331_v3 = vpop.permute.xlu0 %330 }
  0xab   :  { %v265_v55 = vadd.f32 %v261_v45, %v225_v23  ;;  %v266_v56 = vadd.f32 %v262_v47, %v226_v24  ;;  %v1280_v60 = vsel %vm336_vm2, %v331_v3, %v335_v35  ;;  %v1284_v61 = vsel %vm336_vm2, %v335_v35, %v331_v3  ;;  %v1286_v62 = vpop.permute.xlu2 %378 }
  0xac   :  { %v375_v1 = vperm.slane %v1280_v60, 2  ;;  %v376_v34 = vperm.slane %v1284_v61, 2  ;;  %v343_v9 = vperm.slane %v1280_v60, 0  ;;  %v344_v11 = vperm.slane %v1284_v61, 0 }
  0xad   :  { %v275_v5 = vpop.permute.xlu1 %274  ;;  %v301_v23 = vperm.slane %v249_v38, 3  ;;  %v302_v24 = vperm.slane %v251_v22, 3  ;;  %v1050_v38 = vmov 34   ;;  %v1051_v22 = vmov 35  }
  0xae   :  { %v277_v54 = vmul.f32 %v275_v5, %v269_v59  ;;  %v278_v58 = vmul.f32 %v275_v5, %v270_v7  ;;  %v279_v63 = vmul.f32 %v275_v5, %v271_v48  ;;  %v280_v0 = vmul.f32 %v275_v5, %v272_v49  ;;  %954 = vset.pattern.permute.xlu0 %v1051_v22 }
  0xaf   :  { %v1295_v14 = vmul.f32 %v1286_v62, %v375_v1  ;;  %v1298_v10 = vmul.f32 %v1286_v62, %v376_v34  ;;  %v359_v48 = vperm.slane %v1280_v60, 1  ;;  %v360_v49 = vperm.slane %v1284_v61, 1 }
  0xb0   :  { %v281_v2 = vadd.f32 %v277_v54, %v265_v55  ;;  %v282_v8 = vadd.f32 %v278_v58, %v266_v56  ;;  %v283_v57 = vadd.f32 %v279_v63, %v267_v36  ;;  %v284_v52 = vadd.f32 %v280_v0, %v268_v37  ;;  %684 = vrot.lane.b32.xlu1 %v1209_v27, %s1040_s26 }
  0xb1   :  { %947 = vset.pattern.permute.xlu1 %v1049_v16  ;;  %730 = vperm.xlu2 %948, %v1086_v4   ;;  %v303_v27 = vperm.slane %v1241_v12, 3  ;;  %v1052_v56 = vmov 17  }
  0xb2   :  { %v297_v51 = vadd.f32 %v293_v53, %v281_v2  ;;  %v298_v17 = vadd.f32 %v294_v44, %v282_v8  ;;  %v299_v18 = vadd.f32 %v1256_v15, %v283_v57  ;;  %v300_v19 = vadd.f32 %v1259_v21, %v284_v52  ;;  %v347_v50 = vpop.permute.xlu0 %346  ;;  %v762_v21 = vld.sshfl [vmem:[#allocation1 + $0x10] sm:$0xff pattern:$0x75316420]  ;;  %v763_v8 = vld.sshfl [vmem:[#allocation1 + $0x18] sm:$0xff pattern:$0x75316420] }
  0xb3   :  { %v1305_v25 = vpop.permute.xlu2 %416  ;;  %v351_v46 = vmul.f32 %v347_v50, %v343_v9  ;;  %v352_v28 = vmul.f32 %v347_v50, %v344_v11 }
  0xb6   :  { %v307_v26 = vpop.permute.xlu1 %306 }
  0xb7   :  { %v309_v29 = vmul.f32 %v307_v26, %v301_v23  ;;  %v310_v30 = vmul.f32 %v307_v26, %v302_v24  ;;  %v311_v31 = vmul.f32 %v307_v26, %v303_v27  ;;  %v312_v15 = vmul.f32 %v307_v26, %v304_v20 }
  0xb8   :  { %714 = vperm.xlu1 %947, %v1086_v4  }
  0xb9   :  { %v313_v32 = vadd.f32 %v309_v29, %v297_v51  ;;  %v314_v35 = vadd.f32 %v310_v30, %v298_v17  ;;  %v315_v36 = vadd.f32 %v311_v31, %v299_v18  ;;  %v316_v12 = vadd.f32 %v312_v15, %v300_v19  ;;  %770 = vrot.lane.b32.xlu2 %v762_v21, %s1045_s27 }
  0xba   :  { %949 = vset.pattern.permute.xlu2 %v1050_v38  ;;  %v419_v55 = vpop.permute.xlu0 %418  ;;  %v1053_v29 = vmov 26   ;;  %v391_v31 = vperm.slane %v1280_v60, 3  ;;  %v392_v15 = vperm.slane %v1284_v61, 3 }
  0xbb   :  { %v355_v37 = vadd.f32 %v351_v46, %v315_v36  ;;  %v356_v13 = vadd.f32 %v352_v28, %v316_v12  ;;  %v423_v6 = vpop.permute.xlu2 %422 }
  0xbc   :  { %v1326_v7 = vsel %vm424_vm3, %v423_v6, %v419_v55 }
  0xbd   :  { %v464_v63 = vperm.slane %v1326_v7, 2  ;;  %v432_v23 = vperm.slane %v1326_v7, 0 }
  0xbe   :  { %v333_v40 = vpop.permute.xlu1 %332 }
  0xbf   :  { %v337_v41 = vsel %vm336_vm2, %v1248_v43, %v333_v40  ;;  %v339_v42 = vsel %vm336_vm2, %v333_v40, %v1248_v43  ;;  %v1322_v43 = vsel %vm424_vm3, %v419_v55, %v423_v6 }
  0xc0   :  { %v341_v45 = vperm.slane %v337_v41, 0  ;;  %v342_v47 = vperm.slane %v339_v42, 0  ;;  %768 = vrot.lane.b32.xlu1 %v758_v39, %s1045_s27  ;;  %v373_v53 = vperm.slane %v337_v41, 2  ;;  %v374_v44 = vperm.slane %v339_v42, 2 }
  0xc1   :  { %951 = vset.pattern.permute.xlu1 %v1052_v56  ;;  %v463_v58 = vperm.slane %v1322_v43, 2  ;;  %746 = vperm.xlu2 %949, %v1086_v4   ;;  %v357_v34 = vperm.slane %v337_v41, 1  ;;  %v358_v2 = vperm.slane %v339_v42, 1  ;;  %v431_v20 = vperm.slane %v1322_v43, 0 }
  0xc2   :  { %v349_v3 = vmul.f32 %v347_v50, %v341_v45  ;;  %v350_v59 = vmul.f32 %v347_v50, %v342_v47  ;;  %v381_v5 = vmul.f32 %v1286_v62, %v373_v53  ;;  %v382_v54 = vmul.f32 %v1286_v62, %v374_v44  ;;  %v435_v30 = vpop.permute.xlu0 %434 }
  0xc3   :  { %v467_v57 = vpop.permute.xlu2 %466  ;;  %v389_v21 = vperm.slane %v337_v41, 3  ;;  %v439_v36 = vmul.f32 %v435_v30, %v431_v20  ;;  %v440_v12 = vmul.f32 %v435_v30, %v432_v23 }
  0xc4   :  { %v353_v0 = vadd.f32 %v349_v3, %v313_v32  ;;  %v354_v1 = vadd.f32 %v350_v59, %v314_v35  ;;  %v1333_v9 = vmul.f32 %v467_v57, %v463_v58  ;;  %v1335_v11 = vmul.f32 %v467_v57, %v464_v63 }
  0xc5   :  { %v390_v32 = vperm.slane %v339_v42, 3  ;;  %v447_v3 = vperm.slane %v1322_v43, 1  ;;  %v448_v59 = vperm.slane %v1326_v7, 1 }
  0xc6   :  { %v363_v52 = vpop.permute.xlu1 %362 }
  0xc7   :  { %v365_v16 = vmul.f32 %v363_v52, %v357_v34  ;;  %v366_v51 = vmul.f32 %v363_v52, %v358_v2  ;;  %v367_v62 = vmul.f32 %v363_v52, %v359_v48  ;;  %v368_v17 = vmul.f32 %v363_v52, %v360_v49 }
  0xc8   :  { %774 = vrot.lane.b32.xlu1 %v763_v8, %s1045_s27 }
  0xc9   :  { %v369_v18 = vadd.f32 %v365_v16, %v353_v0  ;;  %v370_v19 = vadd.f32 %v366_v51, %v354_v1  ;;  %v371_v50 = vadd.f32 %v367_v62, %v355_v37  ;;  %v372_v27 = vadd.f32 %v368_v17, %v356_v13  ;;  %952 = vset.pattern.permute.xlu2 %v1053_v29 }
  0xca   :  { %818 = vperm.xlu2 %952, %v1086_v4  }
  0xcb   :  { %v385_v24 = vadd.f32 %v381_v5, %v369_v18  ;;  %v386_v26 = vadd.f32 %v382_v54, %v370_v19  ;;  %v387_v46 = vadd.f32 %v1295_v14, %v371_v50  ;;  %v388_v28 = vadd.f32 %v1298_v10, %v372_v27  ;;  %v1346_v48 = vpop.permute.xlu2 %504 }
  0xcc   :  { %v479_v50 = vperm.slane %v1322_v43, 3  ;;  %v480_v27 = vperm.slane %v1326_v7, 3  ;;  %v507_v7 = vpop.permute.xlu0 %506 }
  0xcf   :  { %v395_v35 = vpop.permute.xlu1 %394 }
  0xd0   :  { %v397_v37 = vmul.f32 %v395_v35, %v389_v21  ;;  %v398_v13 = vmul.f32 %v395_v35, %v390_v32  ;;  %v399_v38 = vmul.f32 %v395_v35, %v391_v31  ;;  %v400_v14 = vmul.f32 %v395_v35, %v392_v15  ;;  %802 = vperm.xlu1 %951, %v1086_v4  }
  0xd2   :  { %v401_v10 = vadd.f32 %v397_v37, %v385_v24  ;;  %v402_v39 = vadd.f32 %v398_v13, %v386_v26  ;;  %v403_v6 = vadd.f32 %v399_v38, %v387_v46  ;;  %v404_v40 = vadd.f32 %v400_v14, %v388_v28 }
  0xd4   :  { %v443_v45 = vadd.f32 %v439_v36, %v403_v6  ;;  %v444_v47 = vadd.f32 %v440_v12, %v404_v40  ;;  %v523_v12 = vpop.permute.xlu0 %522 }
  0xd7   :  { %v421_v60 = vpop.permute.xlu1 %420 }
  0xd8   :  { %v425_v61 = vsel %vm424_vm3, %v1305_v25, %v421_v60  ;;  %v427_v41 = vsel %vm424_vm3, %v421_v60, %v1305_v25  ;;  %953 = vset.pattern.permute.xlu1 %v1051_v22 }
  0xd9   :  { %v429_v42 = vperm.slane %v425_v61, 0  ;;  %v430_v49 = vperm.slane %v427_v41, 0  ;;  %834 = vperm.xlu1 %953, %v1086_v4   ;;  %v461_v53 = vperm.slane %v425_v61, 2  ;;  %v462_v44 = vperm.slane %v427_v41, 2  ;;  %v511_v4 = vpop.permute.xlu2 %510 }
  0xda   :  { %v445_v0 = vperm.slane %v425_v61, 1  ;;  %v446_v25 = vperm.slane %v427_v41, 1  ;;  %v477_v20 = vperm.slane %v425_v61, 3  ;;  %v478_v23 = vperm.slane %v427_v41, 3 }
  0xdb   :  { %v437_v55 = vmul.f32 %v435_v30, %v429_v42  ;;  %v438_v56 = vmul.f32 %v435_v30, %v430_v49  ;;  %v469_v5 = vmul.f32 %v467_v57, %v461_v53  ;;  %v470_v54 = vmul.f32 %v467_v57, %v462_v44 }
  0xdc   :  { %v595_v38 = vpop.permute.xlu0 %594 }
  0xdd   :  { %v441_v58 = vadd.f32 %v437_v55, %v401_v10  ;;  %v442_v63 = vadd.f32 %v438_v56, %v402_v39  ;;  %v514_v10 = vsel %vm512_vm4, %v507_v7, %v511_v4  ;;  %v516_v39 = vsel %vm512_vm4, %v511_v4, %v507_v7 }
  0xde   :  { %v519_v40 = vperm.slane %v514_v10, 0  ;;  %v551_v60 = vperm.slane %v514_v10, 2  ;;  %v535_v41 = vperm.slane %v514_v10, 1  ;;  %v536_v42 = vperm.slane %v516_v39, 1 }
  0xdf   :  { %v451_v1 = vpop.permute.xlu1 %450  ;;  %v552_v49 = vperm.slane %v516_v39, 2 }
  0xe0   :  { %v453_v22 = vmul.f32 %v451_v1, %v445_v0  ;;  %v454_v34 = vmul.f32 %v451_v1, %v446_v25  ;;  %v455_v2 = vmul.f32 %v451_v1, %v447_v3  ;;  %v456_v8 = vmul.f32 %v451_v1, %v448_v59 }
  0xe1   :  { %v527_v53 = vmul.f32 %v523_v12, %v519_v40 }
  0xe2   :  { %v457_v52 = vadd.f32 %v453_v22, %v441_v58  ;;  %v458_v16 = vadd.f32 %v454_v34, %v442_v63  ;;  %v459_v51 = vadd.f32 %v455_v2, %v443_v45  ;;  %v460_v62 = vadd.f32 %v456_v8, %v444_v47 }
  0xe3   :  { %v520_v45 = vperm.slane %v516_v39, 0  ;;  %v568_v58 = vperm.slane %v516_v39, 3 }
  0xe4   :  { %v473_v17 = vadd.f32 %v469_v5, %v457_v52  ;;  %v474_v18 = vadd.f32 %v470_v54, %v458_v16  ;;  %v475_v19 = vadd.f32 %v1333_v9, %v459_v51  ;;  %v476_v57 = vadd.f32 %v1335_v11, %v460_v62  ;;  %v1366_v9 = vpop.permute.xlu2 %554  ;;  %v1386_v3 = vpop.permute.xlu0 %610 }
  0xe5   :  { %v528_v44 = vmul.f32 %v523_v12, %v520_v45  ;;  %v567_v54 = vperm.slane %v514_v10, 3  ;;  %v559_v63 = vmul.f32 %v1366_v9, %v551_v60  ;;  %v560_v0 = vmul.f32 %v1366_v9, %v552_v49 }
  0xe8   :  { %v483_v24 = vpop.permute.xlu1 %482 }
  0xe9   :  { %v485_v26 = vmul.f32 %v483_v24, %v477_v20  ;;  %v486_v46 = vmul.f32 %v483_v24, %v478_v23  ;;  %v487_v28 = vmul.f32 %v483_v24, %v479_v50  ;;  %v488_v29 = vmul.f32 %v483_v24, %v480_v27 }
  0xeb   :  { %v1362_v30 = vadd.f32 %v485_v26, %v473_v17  ;;  %v1364_v31 = vadd.f32 %v486_v46, %v474_v18  ;;  %v491_v15 = vadd.f32 %v487_v28, %v475_v19  ;;  %v492_v21 = vadd.f32 %v488_v29, %v476_v57 }
  0xec   :  { %v1368_v32 = vpop.permute.xlu2 %592 }
  0xed   :  { %v531_v34 = vadd.f32 %v527_v53, %v491_v15  ;;  %v532_v2 = vadd.f32 %v528_v44, %v492_v21  ;;  %v683_v15 = vpop.permute.xlu0 %682 }
  0xf0   :  { %v509_v11 = vpop.permute.xlu1 %508 }
  0xf1   :  { %v513_v47 = vsel %vm512_vm4, %v1346_v48, %v509_v11  ;;  %v515_v61 = vsel %vm512_vm4, %v509_v11, %v1346_v48 }
  0xf2   :  { %v517_v55 = vperm.slane %v513_v47, 0  ;;  %v518_v59 = vperm.slane %v515_v61, 0  ;;  %v533_v4 = vperm.slane %v513_v47, 1  ;;  %v534_v16 = vperm.slane %v515_v61, 1 }
  0xf3   :  { %v549_v26 = vperm.slane %v513_v47, 2  ;;  %v550_v46 = vperm.slane %v515_v61, 2 }
  0xf4   :  { %v599_v35 = vpop.permute.xlu2 %598  ;;  %v525_v8 = vmul.f32 %v523_v12, %v517_v55  ;;  %v526_v52 = vmul.f32 %v523_v12, %v518_v59  ;;  %v565_v12 = vperm.slane %v513_v47, 3 }
  0xf5   :  { %v1384_v56 = vsel %vm600_vm5, %v595_v38, %v599_v35  ;;  %v1393_v48 = vsel %vm600_vm5, %v599_v35, %v595_v38  ;;  %v557_v60 = vmul.f32 %v1366_v9, %v549_v26 }
  0xf6   :  { %v607_v22 = vperm.slane %v1384_v56, 0  ;;  %v608_v51 = vperm.slane %v1393_v48, 0  ;;  %v623_v62 = vperm.slane %v1384_v56, 1  ;;  %v624_v19 = vperm.slane %v1393_v48, 1 }
  0xf7   :  { %v639_v57 = vperm.slane %v1384_v56, 2  ;;  %v640_v50 = vperm.slane %v1393_v48, 2  ;;  %v529_v28 = vadd.f32 %v525_v8, %v1362_v30  ;;  %v530_v21 = vadd.f32 %v526_v52, %v1364_v31 }
  0xf8   :  { %v539_v43 = vpop.permute.xlu1 %538  ;;  %v615_v24 = vmul.f32 %v1386_v3, %v607_v22  ;;  %v566_v30 = vperm.slane %v515_v61, 3  ;;  %v616_v10 = vmul.f32 %v1386_v3, %v608_v51  ;;  %v655_v49 = vperm.slane %v1384_v56, 3 }
  0xf9   :  { %v543_v25 = vmul.f32 %v539_v43, %v535_v41  ;;  %v544_v1 = vmul.f32 %v539_v43, %v536_v42  ;;  %v541_v18 = vmul.f32 %v539_v43, %v533_v4  ;;  %v542_v27 = vmul.f32 %v539_v43, %v534_v16  ;;  %v699_v16 = vpop.permute.xlu0 %698 }
  0xfa   :  { %v558_v41 = vmul.f32 %v1366_v9, %v550_v46  ;;  %v656_v53 = vperm.slane %v1393_v48, 3 }
  0xfb   :  { %v547_v20 = vadd.f32 %v543_v25, %v531_v34  ;;  %v548_v23 = vadd.f32 %v544_v1, %v532_v2  ;;  %v545_v38 = vadd.f32 %v541_v18, %v529_v28  ;;  %v546_v39 = vadd.f32 %v542_v27, %v530_v21 }
  0xfc   :  { %v1372_v13 = vpop.permute.xlu2 %642 }
  0xfd   :  { %v563_v40 = vadd.f32 %v559_v63, %v547_v20  ;;  %v564_v45 = vadd.f32 %v560_v0, %v548_v23  ;;  %v647_v44 = vmul.f32 %v1372_v13, %v639_v57  ;;  %v648_v55 = vmul.f32 %v1372_v13, %v640_v50 }
  0xfe   :  { %v561_v59 = vadd.f32 %v557_v60, %v545_v38  ;;  %v562_v9 = vadd.f32 %v558_v41, %v546_v39 }
 0x101   :  { %v1370_v36 = vpop.permute.xlu1 %570 }
 0x102   :  { %v575_v11 = vmul.f32 %v1370_v36, %v567_v54  ;;  %v576_v43 = vmul.f32 %v1370_v36, %v568_v58 }
 0x104   :  { %v1377_v6 = vpop.permute.xlu2 %680  ;;  %v579_v47 = vadd.f32 %v575_v11, %v563_v40  ;;  %v580_v61 = vadd.f32 %v576_v43, %v564_v45 }
 0x106   :  { %v619_v22 = vadd.f32 %v615_v24, %v579_v47  ;;  %v620_v34 = vadd.f32 %v616_v10, %v580_v61 }
 0x109   :  { %v597_v37 = vpop.permute.xlu1 %596 }
 0x10a   :  { %v1407_v29 = vsel %vm600_vm5, %v1368_v32, %v597_v37  ;;  %v1415_v7 = vsel %vm600_vm5, %v597_v37, %v1368_v32  ;;  %v573_v32 = vmul.f32 %v1370_v36, %v565_v12  ;;  %v574_v37 = vmul.f32 %v1370_v36, %v566_v30 }
 0x10b   :  { %v605_v31 = vperm.slane %v1407_v29, 0  ;;  %v606_v42 = vperm.slane %v1415_v7, 0  ;;  %v621_v56 = vperm.slane %v1407_v29, 1  ;;  %v622_v48 = vperm.slane %v1415_v7, 1 }
 0x10c   :  { %v687_v17 = vpop.permute.xlu2 %686  ;;  %v577_v25 = vadd.f32 %v573_v32, %v561_v59  ;;  %v578_v1 = vadd.f32 %v574_v37, %v562_v9  ;;  %v637_v51 = vperm.slane %v1407_v29, 2  ;;  %v654_v11 = vperm.slane %v1415_v7, 3  ;;  %v773_v32 = vpop.permute.xlu0 %772 }
 0x10d   :  { %v613_v54 = vmul.f32 %v1386_v3, %v605_v31  ;;  %v1432_v58 = vsel %vm688_vm6, %v683_v15, %v687_v17  ;;  %v614_v36 = vmul.f32 %v1386_v3, %v606_v42  ;;  %v1445_v3 = vsel %vm688_vm6, %v687_v17, %v683_v15 }
 0x10e   :  { %v695_v57 = vperm.slane %v1432_v58, 0  ;;  %v653_v17 = vperm.slane %v1407_v29, 3  ;;  %v711_v23 = vperm.slane %v1432_v58, 1  ;;  %v712_v24 = vperm.slane %v1445_v3, 1 }
 0x10f   :  { %v617_v18 = vadd.f32 %v613_v54, %v577_v25  ;;  %v618_v50 = vadd.f32 %v614_v36, %v578_v1  ;;  %v645_v21 = vmul.f32 %v1372_v13, %v637_v51  ;;  %v727_v38 = vperm.slane %v1432_v58, 2 }
 0x110   :  { %v728_v10 = vperm.slane %v1445_v3, 2  ;;  %v703_v40 = vmul.f32 %v699_v16, %v695_v57  ;;  %v743_v36 = vperm.slane %v1432_v58, 3 }
 0x111   :  { %v1375_v14 = vpop.permute.xlu1 %626 }
 0x112   :  { %v631_v0 = vmul.f32 %v1375_v14, %v623_v62  ;;  %v629_v8 = vmul.f32 %v1375_v14, %v621_v56  ;;  %v630_v4 = vmul.f32 %v1375_v14, %v622_v48  ;;  %v632_v52 = vmul.f32 %v1375_v14, %v624_v19 }
 0x113   :  { %v638_v62 = vperm.slane %v1415_v7, 2  ;;  %v696_v19 = vperm.slane %v1445_v3, 0 }
 0x114   :  { %v1434_v63 = vpop.permute.xlu2 %730  ;;  %v635_v27 = vadd.f32 %v631_v0, %v619_v22  ;;  %v633_v26 = vadd.f32 %v629_v8, %v617_v18  ;;  %v634_v46 = vadd.f32 %v630_v4, %v618_v50  ;;  %v636_v28 = vadd.f32 %v632_v52, %v620_v34 }
 0x115   :  { %v646_v29 = vmul.f32 %v1372_v13, %v638_v62  ;;  %v735_v34 = vmul.f32 %v1434_v63, %v727_v38  ;;  %v736_v8 = vmul.f32 %v1434_v63, %v728_v10 }
 0x116   :  { %v649_v31 = vadd.f32 %v645_v21, %v633_v26  ;;  %v652_v41 = vadd.f32 %v648_v55, %v636_v28  ;;  %v744_v55 = vperm.slane %v1445_v3, 3  ;;  %v787_v26 = vpop.permute.xlu0 %786 }
 0x117   :  { %v650_v60 = vadd.f32 %v646_v29, %v634_v46 }
 0x11a   :  { %v1388_v5 = vpop.permute.xlu1 %658 }
 0x11b   :  { %v663_v15 = vmul.f32 %v1388_v5, %v655_v49  ;;  %v661_v12 = vmul.f32 %v1388_v5, %v653_v17  ;;  %v664_v30 = vmul.f32 %v1388_v5, %v656_v53  ;;  %v662_v39 = vmul.f32 %v1388_v5, %v654_v11 }
 0x11c   :  { %v771_v45 = vpop.permute.xlu2 %770 }
 0x11d   :  { %v665_v49 = vadd.f32 %v661_v12, %v649_v31  ;;  %v668_v53 = vadd.f32 %v664_v30, %v652_v41  ;;  %v666_v5 = vadd.f32 %v662_v39, %v650_v60 }
 0x122   :  { %v685_v35 = vpop.permute.xlu1 %684 }
 0x123   :  { %v1453_v20 = vsel %vm688_vm6, %v1377_v6, %v685_v35  ;;  %v1458_v14 = vsel %vm688_vm6, %v685_v35, %v1377_v6  ;;  %v651_v35 = vadd.f32 %v647_v44, %v635_v27  ;;  %v704_v44 = vmul.f32 %v699_v16, %v696_v19 }
 0x124   :  { %v693_v6 = vperm.slane %v1453_v20, 0  ;;  %v694_v43 = vperm.slane %v1458_v14, 0  ;;  %v709_v47 = vperm.slane %v1453_v20, 1  ;;  %v710_v61 = vperm.slane %v1458_v14, 1  ;;  %v747_v17 = vpop.permute.xlu2 %746 }
 0x125   :  { %v667_v42 = vadd.f32 %v663_v15, %v651_v35  ;;  %v725_v48 = vperm.slane %v1453_v20, 2  ;;  %v726_v0 = vperm.slane %v1458_v14, 2  ;;  %v708_v4 = vadd.f32 %v704_v44, %v668_v53 }
 0x126   :  { %v701_v13 = vmul.f32 %v699_v16, %v693_v6  ;;  %v702_v37 = vmul.f32 %v699_v16, %v694_v43  ;;  %v742_v57 = vperm.slane %v1458_v14, 3  ;;  %v751_v11 = vmul.f32 %v747_v17, %v743_v36 }
 0x127   :  { %v707_v56 = vadd.f32 %v703_v40, %v667_v42  ;;  %v733_v18 = vmul.f32 %v1434_v63, %v725_v48  ;;  %v734_v27 = vmul.f32 %v1434_v63, %v726_v0  ;;  %v752_v6 = vmul.f32 %v747_v17, %v744_v55 }
 0x128   :  { %v705_v25 = vadd.f32 %v701_v13, %v665_v49  ;;  %v706_v1 = vadd.f32 %v702_v37, %v666_v5  ;;  %v750_v63 = vmul.f32 %v747_v17, %v742_v57 }
 0x12a   :  { %v715_v2 = vpop.permute.xlu1 %714 }
 0x12b   :  { %v717_v59 = vmul.f32 %v715_v2, %v709_v47  ;;  %v718_v9 = vmul.f32 %v715_v2, %v710_v61  ;;  %v719_v54 = vmul.f32 %v715_v2, %v711_v23  ;;  %v720_v22 = vmul.f32 %v715_v2, %v712_v24 }
 0x12c   :  { %v741_v2 = vperm.slane %v1453_v20, 3 }
 0x12d   :  { %v721_v58 = vadd.f32 %v717_v59, %v705_v25  ;;  %v722_v16 = vadd.f32 %v718_v9, %v706_v1  ;;  %v723_v3 = vadd.f32 %v719_v54, %v707_v56  ;;  %v724_v19 = vadd.f32 %v720_v22, %v708_v4  ;;  %v819_v59 = vpop.permute.xlu2 %818 }
 0x12e   :  { %v749_v21 = vmul.f32 %v747_v17, %v741_v2 }
 0x12f   :  { %v739_v28 = vadd.f32 %v735_v34, %v723_v3  ;;  %v737_v14 = vadd.f32 %v733_v18, %v721_v58  ;;  %v738_v15 = vadd.f32 %v734_v27, %v722_v16  ;;  %v740_v29 = vadd.f32 %v736_v8, %v724_v19 }
 0x131   :  { %v753_v39 = vadd.f32 %v749_v21, %v737_v14  ;;  %v754_v40 = vadd.f32 %v750_v63, %v738_v15  ;;  %v756_v61 = vadd.f32 %v752_v6, %v740_v29 }
 0x132   :  { %v769_v7 = vpop.permute.xlu1 %768 }
 0x133   :  { %v1486_v52 = vsel %vm776_vm7, %v769_v7, %v773_v32  ;;  %v1490_v51 = vsel %vm776_vm7, %v773_v32, %v769_v7  ;;  %v755_v7 = vadd.f32 %v751_v11, %v739_v28 }
 0x134   :  { %v781_v23 = vperm.slane %v1486_v52, 0  ;;  %v782_v46 = vperm.slane %v1490_v51, 0  ;;  %v797_v35 = vperm.slane %v1486_v52, 1  ;;  %v798_v33 = vperm.slane %v1490_v51, 1 }
 0x135   :  { %v813_v13 = vperm.slane %v1486_v52, 2  ;;  %v814_v37 = vperm.slane %v1490_v51, 2  ;;  %v829_v22 = vperm.slane %v1486_v52, 3  ;;  %v830_v34 = vperm.slane %v1490_v51, 3 }
 0x136   :  { %v789_v12 = vmul.f32 %v787_v26, %v781_v23  ;;  %v790_v30 = vmul.f32 %v787_v26, %v782_v46 }
 0x137   :  { %v821_v48 = vmul.f32 %v819_v59, %v813_v13  ;;  %v822_v0 = vmul.f32 %v819_v59, %v814_v37 }
 0x138   :  { %v793_v47 = vadd.f32 %v789_v12, %v753_v39  ;;  %v794_v49 = vadd.f32 %v790_v30, %v754_v40 }
 0x13a   :  { %v775_v62 = vpop.permute.xlu1 %774 }
 0x13b   :  { %v1497_v50 = vsel %vm776_vm7, %v771_v45, %v775_v62  ;;  %v780_v24 = vsel %vm776_vm7, %v775_v62, %v771_v45 }
 0x13c   :  { %v783_v20 = vperm.slane %v1497_v50, 0  ;;  %v784_v43 = vperm.slane %v780_v24, 0  ;;  %v799_v10 = vperm.slane %v1497_v50, 1  ;;  %v800_v45 = vperm.slane %v780_v24, 1 }
 0x13d   :  { %v815_v53 = vperm.slane %v1497_v50, 2  ;;  %v816_v9 = vperm.slane %v780_v24, 2  ;;  %v831_v8 = vperm.slane %v1497_v50, 3  ;;  %v832_v4 = vperm.slane %v780_v24, 3 }
 0x13e   :  { %v791_v38 = vmul.f32 %v787_v26, %v783_v20  ;;  %v792_v60 = vmul.f32 %v787_v26, %v784_v43 }
 0x13f   :  { %v823_v25 = vmul.f32 %v819_v59, %v815_v53  ;;  %v824_v58 = vmul.f32 %v819_v59, %v816_v9 }
 0x140   :  { %v795_v44 = vadd.f32 %v791_v38, %v755_v7  ;;  %v796_v54 = vadd.f32 %v792_v60, %v756_v61 }
 0x142   :  { %v803_v31 = vpop.permute.xlu1 %802 }
 0x143   :  { %v805_v41 = vmul.f32 %v803_v31, %v797_v35  ;;  %v806_v42 = vmul.f32 %v803_v31, %v798_v33  ;;  %v807_v32 = vmul.f32 %v803_v31, %v799_v10  ;;  %v808_v5 = vmul.f32 %v803_v31, %v800_v45 }
 0x145   :  { %v809_v36 = vadd.f32 %v805_v41, %v793_v47  ;;  %v810_v55 = vadd.f32 %v806_v42, %v794_v49  ;;  %v811_v56 = vadd.f32 %v807_v32, %v795_v44  ;;  %v812_v1 = vadd.f32 %v808_v5, %v796_v54 }
 0x147   :  { %v827_v16 = vadd.f32 %v823_v25, %v811_v56  ;;  %v825_v62 = vadd.f32 %v821_v48, %v809_v36  ;;  %v826_v18 = vadd.f32 %v822_v0, %v810_v55  ;;  %v828_v19 = vadd.f32 %v824_v58, %v812_v1 }
 0x14b   :  { %v835_v3 = vpop.permute.xlu1 %834 }
 0x14c   :  { %v837_v2 = vmul.f32 %v835_v3, %v829_v22  ;;  %v838_v57 = vmul.f32 %v835_v3, %v830_v34  ;;  %v839_v27 = vmul.f32 %v835_v3, %v831_v8  ;;  %v840_v17 = vmul.f32 %v835_v3, %v832_v4 }
 0x14e   :  { %v841_v52 = vadd.f32 %v837_v2, %v825_v62  ;;  %v842_v51 = vadd.f32 %v838_v57, %v826_v18  ;;  %v843_v50 = vadd.f32 %v839_v27, %v827_v16  ;;  %v844_v23 = vadd.f32 %v840_v17, %v828_v19 }
 0x150   :  { %845 = vst [vmem:[#allocation5] sm:$0xff] %v841_v52 }
 0x151   :  { %846 = vst [vmem:[#allocation5 + $0x8] sm:$0xff] %v842_v51 }
 0x152   :  { %847 = vst [vmem:[#allocation5 + $0x10] sm:$0xff] %v843_v50 }
 0x153   :  { %848 = vst [vmem:[#allocation5 + $0x18] sm:$0xff] %v844_v23 }
 0x154   :  { %861 = dma.vmem_to_hbm [thread:$0]  %s854_s29, 512, %s856_s5, [#allocation4], %s1055_s6, %s1055_s6, %s1056_s7  }
 0x155   :  { %1005 = dma.done.wait [#allocation4], 512  }
 0x156   :  { %1006 = vsyncadd [#allocation4], 4294966784 }
 0x157   :  { %866 = vsyncpa [#allocation3], 1 }
 0x158   :  { %867 = vsyncpa [#allocation4], 1 }

</bundles_post_ra>
